<compile_context>
chip_gen: v7x
topology: tpu7x:2x2x1
jax: 0.10.0
libtpu: 0.0.40
codegen_flags: <defaults>
</compile_context>

<pallas_src>
import jax
import jax.numpy as jnp
from jax.experimental import pallas as pl
from jax.experimental.pallas import tpu as pltpu


# --------------------------------- activations ---------------------------------

def _relu(v):
    return jnp.maximum(v, 0.0)


def _gelu_tanh(v):
    # TODO(synk): PyTorch nn.GELU defaults to exact erf; tanh approximation used (EUP-friendly).
    c = 0.7978845608028654  # sqrt(2/pi)
    return 0.5 * v * (1.0 + jnp.tanh(c * (v + 0.044715 * v * v * v)))


# ---------------- kernel A: fused MaxPool2x2 + Conv3x3 (no bias) + BN + ReLU ----------------

def pool_conv1(x_nhwc, w9, scale, bias):
    """x_nhwc: (B, H, W, Cin) f32 -> (B, H2*W2, Cmid) bf16."""
    B, H, W, Cin = x_nhwc.shape
    H2, W2 = H // 2, W // 2
    Cmid = w9.shape[2]
    P = H2 * W2
    # contiguous split (no relayout): (B, H2, 2, W2, 2*Cin)
    xr = x_nhwc.reshape(B, H2, 2, W2, 2 * Cin)

    def kernel(x_ref, w_ref, s_ref, b_ref, o_ref, pad_scr):
        # fused 2x2 / stride-2 max pool: row pair via dim-2 index, col pair via lane halves
        r0 = x_ref[0, :, 0, :, :]                              # (H2, W2, 2*Cin)
        r1 = x_ref[0, :, 1, :, :]
        m = jnp.maximum(r0, r1)
        pooled = jnp.maximum(m[:, :, :Cin], m[:, :, Cin:])     # (H2, W2, Cin)

        # zero-padded halo scratch (padding=1)
        pad_scr[...] = jnp.zeros_like(pad_scr)
        pad_scr[1:H2 + 1, 1:W2 + 1, :] = pooled

        # in-kernel im2col: 9 shifted bf16 MXU dots -> f32 accumulator
        acc = jnp.zeros((P, Cmid), jnp.float32)
        for t in range(9):
            ky, kx = t // 3, t % 3
            patch = pad_scr[ky:ky + H2, kx:kx + W2, :].reshape(P, Cin).astype(jnp.bfloat16)
            acc = acc + jnp.dot(patch, w_ref[t], preferred_element_type=jnp.float32)

        y = _relu(acc * s_ref[...] + b_ref[...])               # folded BN + ReLU, f32
        o_ref[0] = y.astype(o_ref.dtype)

    return pl.pallas_call(
        kernel,
        out_shape=jax.ShapeDtypeStruct((B, P, Cmid), jnp.bfloat16),
        grid=(B,),
        in_specs=[
            pl.BlockSpec((1, H2, 2, W2, 2 * Cin), lambda b: (b, 0, 0, 0, 0)),
            pl.BlockSpec((9, Cin, Cmid), lambda b: (0, 0, 0)),
            pl.BlockSpec((1, Cmid), lambda b: (0, 0)),
            pl.BlockSpec((1, Cmid), lambda b: (0, 0)),
        ],
        out_specs=pl.BlockSpec((1, P, Cmid), lambda b: (b, 0, 0)),
        scratch_shapes=[pltpu.VMEM((H2 + 2, W2 + 2, Cin), jnp.float32)],
        compiler_params=pltpu.CompilerParams(dimension_semantics=("parallel",)),
    )(xr, w9, scale, bias)


# ------ kernel B: fused ConvolutionalGLU (fc1 -> dw3x3+GELU -> gate -> fc2 -> +residual) ------
# ------                    followed by Conv3x3 (no bias) + BN + ReLU                     ------

def cglu_conv2(y, pk, H2, W2):
    """y: (B, H2*W2, Cmid) bf16 -> (B, H2*W2, Cout) f32."""
    B, P, Cmid = y.shape
    hid = pk["fc1_wg"].shape[1]
    Cout = pk["conv2_w"].shape[2]

    def kernel(y_ref, w1g_ref, w1v_ref, b1g_ref, b1v_ref, wd_ref, bd_ref,
               w2_ref, b2_ref, wc_ref, sc_ref, bc_ref, o_ref, pad_g, pad_z):
        x_bf = y_ref[0]                                        # (P, Cmid) bf16
        x_f32 = x_bf.astype(jnp.float32)

        # fc1 (1x1 conv + bias); the chunk(2, dim=channels) is folded into two weight halves
        xg = jnp.dot(x_bf, w1g_ref[...], preferred_element_type=jnp.float32) + b1g_ref[...]
        v = jnp.dot(x_bf, w1v_ref[...], preferred_element_type=jnp.float32) + b1v_ref[...]

        # depthwise 3x3 (padding=1, + bias) + GELU via zero-padded halo scratch
        pad_g[...] = jnp.zeros_like(pad_g)
        pad_g[1:H2 + 1, 1:W2 + 1, :] = xg.reshape(H2, W2, hid)
        acc_g = jnp.zeros((H2, W2, hid), jnp.float32)
        for t in range(9):
            ky, kx = t // 3, t % 3
            acc_g = acc_g + pad_g[ky:ky + H2, kx:kx + W2, :] * wd_ref[t]
        g = _gelu_tanh(acc_g + bd_ref[...])

        # gate, fc2 (1x1 conv + bias), residual — all kept in VMEM
        gated = (g.reshape(P, hid) * v).astype(jnp.bfloat16)
        z = (jnp.dot(gated, w2_ref[...], preferred_element_type=jnp.float32)
             + b2_ref[...] + x_f32)                            # (P, Cmid)

        # conv2: 3x3 + folded BN + ReLU, in-kernel im2col
        pad_z[...] = jnp.zeros_like(pad_z)
        pad_z[1:H2 + 1, 1:W2 + 1, :] = z.reshape(H2, W2, Cmid)
        acc = jnp.zeros((P, Cout), jnp.float32)
        for t in range(9):
            ky, kx = t // 3, t % 3
            patch = pad_z[ky:ky + H2, kx:kx + W2, :].reshape(P, Cmid).astype(jnp.bfloat16)
            acc = acc + jnp.dot(patch, wc_ref[t], preferred_element_type=jnp.float32)
        out = _relu(acc * sc_ref[...] + bc_ref[...])
        o_ref[0] = out.astype(o_ref.dtype)

    rep2 = lambda b: (0, 0)
    rep3 = lambda b: (0, 0, 0)
    return pl.pallas_call(
        kernel,
        out_shape=jax.ShapeDtypeStruct((B, P, Cout), jnp.float32),
        grid=(B,),
        in_specs=[
            pl.BlockSpec((1, P, Cmid), lambda b: (b, 0, 0)),
            pl.BlockSpec((Cmid, hid), rep2),
            pl.BlockSpec((Cmid, hid), rep2),
            pl.BlockSpec((1, hid), rep2),
            pl.BlockSpec((1, hid), rep2),
            pl.BlockSpec((9, 1, hid), rep3),
            pl.BlockSpec((1, hid), rep2),
            pl.BlockSpec((hid, Cmid), rep2),
            pl.BlockSpec((1, Cmid), rep2),
            pl.BlockSpec((9, Cmid, Cout), rep3),
            pl.BlockSpec((1, Cout), rep2),
            pl.BlockSpec((1, Cout), rep2),
        ],
        out_specs=pl.BlockSpec((1, P, Cout), lambda b: (b, 0, 0)),
        scratch_shapes=[
            pltpu.VMEM((H2 + 2, W2 + 2, hid), jnp.float32),
            pltpu.VMEM((H2 + 2, W2 + 2, Cmid), jnp.float32),
        ],
        compiler_params=pltpu.CompilerParams(dimension_semantics=("parallel",)),
    )(y, pk["fc1_wg"], pk["fc1_wv"], pk["fc1_bg"], pk["fc1_bv"],
      pk["dw_w"], pk["dw_b"], pk["fc2_w"], pk["fc2_b"],
      pk["conv2_w"], pk["conv2_s"], pk["conv2_b"])


# ----------------------------------- parameters -----------------------------------

def init_raw_params(key, cin, cout, mid, hid):
    ks = jax.random.split(key, 5)

    def conv_bn(k, ci, co, ksz):
        k1, k2, k3, k4, k5 = jax.random.split(k, 5)
        w = jax.random.normal(k1, (co, ci, ksz, ksz), jnp.float32) * 0.1
        gamma = jax.random.uniform(k2, (co,), jnp.float32, 0.8, 1.2)
        beta = jax.random.normal(k3, (co,), jnp.float32) * 0.1
        mean = jax.random.normal(k4, (co,), jnp.float32) * 0.1
        var = jax.random.uniform(k5, (co,), jnp.float32, 0.5, 1.5)
        scale = gamma / jnp.sqrt(var + 1e-5)       # eval-mode BN fold
        bias = beta - mean * scale
        return w, scale, bias

    def conv_b(k, ci, co, ksz, groups=1):
        k1, k2 = jax.random.split(k)
        w = jax.random.normal(k1, (co, ci // groups, ksz, ksz), jnp.float32) * 0.1
        b = jax.random.normal(k2, (co,), jnp.float32) * 0.1
        return w, b

    return {
        "conv1": conv_bn(ks[0], cin, mid, 3),          # Conv(in, mid) 3x3 + BN + ReLU
        "fc1": conv_b(ks[1], mid, 2 * hid, 1),         # CGLU fc1
        "dwconv": conv_b(ks[2], hid, hid, 3, groups=hid),  # CGLU depthwise 3x3
        "fc2": conv_b(ks[3], hid, mid, 1),             # CGLU fc2
        "conv2": conv_bn(ks[4], mid, cout, 3),         # Conv(mid, out) 3x3 + BN + ReLU
    }


def pack_params(raw, cin, mid, cout, hid):
    """Pre-pack weights: tap-major 3x3 kernels, transposed 1x1 mats, bf16 for MXU operands."""
    w1, s1, b1 = raw["conv1"]
    wf1, bf1 = raw["fc1"]
    wd, bd = raw["dwconv"]
    wf2, bf2 = raw["fc2"]
    w2, s2, b2 = raw["conv2"]
    wm1 = wf1[:, :, 0, 0]                               # (2*hid, mid)
    return {
        "conv1_w": jnp.transpose(w1, (2, 3, 1, 0)).reshape(9, cin, mid).astype(jnp.bfloat16),
        "conv1_s": s1.reshape(1, mid),
        "conv1_b": b1.reshape(1, mid),
        "fc1_wg": jnp.transpose(wm1[:hid]).astype(jnp.bfloat16),   # (mid, hid): chunk half "x"
        "fc1_wv": jnp.transpose(wm1[hid:]).astype(jnp.bfloat16),   # (mid, hid): chunk half "v"
        "fc1_bg": bf1[:hid].reshape(1, hid),
        "fc1_bv": bf1[hid:].reshape(1, hid),
        "dw_w": jnp.transpose(wd[:, 0], (1, 2, 0)).reshape(9, 1, hid),  # tap-major, f32 (VPU)
        "dw_b": bd.reshape(1, hid),
        "fc2_w": jnp.transpose(wf2[:, :, 0, 0]).astype(jnp.bfloat16),   # (hid, mid)
        "fc2_b": bf2.reshape(1, mid),
        "conv2_w": jnp.transpose(w2, (2, 3, 1, 0)).reshape(9, mid, cout).astype(jnp.bfloat16),
        "conv2_s": s2.reshape(1, cout),
        "conv2_b": b2.reshape(1, cout),
    }


# ------------------------------------- forward -------------------------------------

def down_attention_cglu(x_nchw, pk):
    B, _, H, W = x_nchw.shape
    H2, W2 = H // 2, W // 2
    x = jnp.transpose(x_nchw, (0, 2, 3, 1))             # NCHW -> NHWC (layout glue)
    y = pool_conv1(x, pk["conv1_w"], pk["conv1_s"], pk["conv1_b"])   # (B, H2*W2, Cmid) bf16
    out = cglu_conv2(y, pk, H2, W2)                     # (B, H2*W2, Cout) f32
    Cout = pk["conv2_w"].shape[2]
    out = out.reshape(B, H2, W2, Cout)                  # free reshape
    return jnp.transpose(out, (0, 3, 1, 2))             # NHWC -> NCHW


# --------------------------------------- main ---------------------------------------

if __name__ == "__main__":
    B, Cin, H, W = 2, 4, 16, 16
    Cout = 16

    mid = Cout                    # DoubleConvAttentionCGLU: mid_channels defaults to out_channels
    hid = int(2 * mid / 3)        # ConvolutionalGLU: hidden_features = int(2 * in_features / 3)

    key = jax.random.PRNGKey(0)
    kx, kp = jax.random.split(key)
    x = jax.random.normal(kx, (B, Cin, H, W), jnp.float32)

    raw = init_raw_params(kp, Cin, Cout, mid, hid)
    pk = pack_params(raw, Cin, mid, Cout, hid)

    fwd = jax.jit(lambda inp: down_attention_cglu(inp, pk))
    out = fwd(x)
    jax.block_until_ready(out)

    assert out.shape == (B, Cout, H // 2, W // 2), out.shape
    assert bool(jnp.all(jnp.isfinite(out)))
    print("KERNEL_OK")
</pallas_src>

<mosaic_0001>
module attributes {stable_mosaic.version = 11 : i64} {
  func.func @kernel(%arg0: i32, %arg1: memref<1x64x16xbf16, #tpu.memory_space<vmem>>, %arg2: memref<16x10xbf16, #tpu.memory_space<vmem>>, %arg3: memref<16x10xbf16, #tpu.memory_space<vmem>>, %arg4: memref<1x10xf32, #tpu.memory_space<vmem>>, %arg5: memref<1x10xf32, #tpu.memory_space<vmem>>, %arg6: memref<9x1x10xf32, #tpu.memory_space<vmem>>, %arg7: memref<1x10xf32, #tpu.memory_space<vmem>>, %arg8: memref<10x16xbf16, #tpu.memory_space<vmem>>, %arg9: memref<1x16xf32, #tpu.memory_space<vmem>>, %arg10: memref<9x16x16xbf16, #tpu.memory_space<vmem>>, %arg11: memref<1x16xf32, #tpu.memory_space<vmem>>, %arg12: memref<1x16xf32, #tpu.memory_space<vmem>>, %arg13: memref<1x64x16xf32, #tpu.memory_space<vmem>>, %arg14: memref<10x10x10xf32, #tpu.memory_space<vmem>>, %arg15: memref<10x10x16xf32, #tpu.memory_space<vmem>>) attributes {dimension_semantics = [#tpu.dimension_semantics<parallel>], iteration_bounds = array<i64: 2>, scalar_prefetch = 0 : i64, scratch_operands = 2 : i64, tpu.core_type = #tpu.core_type<tc>, window_params = [{transform_indices = @transform_0, window_bounds = array<i64: 1, 64, 16>}, {pipeline_mode = #tpu.pipeline_mode<synchronous>, transform_indices = @transform_1, window_bounds = array<i64: 16, 10>}, {pipeline_mode = #tpu.pipeline_mode<synchronous>, transform_indices = @transform_2, window_bounds = array<i64: 16, 10>}, {pipeline_mode = #tpu.pipeline_mode<synchronous>, transform_indices = @transform_3, window_bounds = array<i64: 1, 10>}, {pipeline_mode = #tpu.pipeline_mode<synchronous>, transform_indices = @transform_4, window_bounds = array<i64: 1, 10>}, {pipeline_mode = #tpu.pipeline_mode<synchronous>, transform_indices = @transform_5, window_bounds = array<i64: 9, 1, 10>}, {pipeline_mode = #tpu.pipeline_mode<synchronous>, transform_indices = @transform_6, window_bounds = array<i64: 1, 10>}, {pipeline_mode = #tpu.pipeline_mode<synchronous>, transform_indices = @transform_7, window_bounds = array<i64: 10, 16>}, {pipeline_mode = #tpu.pipeline_mode<synchronous>, transform_indices = @transform_8, window_bounds = array<i64: 1, 16>}, {pipeline_mode = #tpu.pipeline_mode<synchronous>, transform_indices = @transform_9, window_bounds = array<i64: 9, 16, 16>}, {pipeline_mode = #tpu.pipeline_mode<synchronous>, transform_indices = @transform_10, window_bounds = array<i64: 1, 16>}, {pipeline_mode = #tpu.pipeline_mode<synchronous>, transform_indices = @transform_11, window_bounds = array<i64: 1, 16>}, {transform_indices = @transform_12, window_bounds = array<i64: 1, 64, 16>}]} {
    %c0 = arith.constant 0 : index
    %c0_0 = arith.constant 0 : index
    %c0_1 = arith.constant 0 : index
    %0 = vector.load %arg1[%c0, %c0_0, %c0_1] : memref<1x64x16xbf16, #tpu.memory_space<vmem>>, vector<1x64x16xbf16>
    %1 = vector.shape_cast %0 : vector<1x64x16xbf16> to vector<64x16xbf16>
    %2 = arith.extf %1 : vector<64x16xbf16> to vector<64x16xf32>
    %c0_2 = arith.constant 0 : index
    %c0_3 = arith.constant 0 : index
    %3 = vector.load %arg2[%c0_2, %c0_3] : memref<16x10xbf16, #tpu.memory_space<vmem>>, vector<16x10xbf16>
    %cst = arith.constant dense<0.000000e+00> : vector<64x10xf32>
    %4 = tpu.matmul %1, %3, %cst {dimension_numbers = #tpu.dot_dimension_numbers<[1], [0], [0], [1], [0, 0, 1, 1], [], []>} : vector<64x16xbf16>, vector<16x10xbf16>, vector<64x10xf32> -> vector<64x10xf32>
    %c0_4 = arith.constant 0 : index
    %c0_5 = arith.constant 0 : index
    %5 = vector.load %arg4[%c0_4, %c0_5] : memref<1x10xf32, #tpu.memory_space<vmem>>, vector<1x10xf32>
    %6 = vector.broadcast %5 : vector<1x10xf32> to vector<64x10xf32>
    %7 = arith.addf %4, %6 : vector<64x10xf32>
    %c0_6 = arith.constant 0 : index
    %c0_7 = arith.constant 0 : index
    %8 = vector.load %arg3[%c0_6, %c0_7] : memref<16x10xbf16, #tpu.memory_space<vmem>>, vector<16x10xbf16>
    %cst_8 = arith.constant dense<0.000000e+00> : vector<64x10xf32>
    %9 = tpu.matmul %1, %8, %cst_8 {dimension_numbers = #tpu.dot_dimension_numbers<[1], [0], [0], [1], [0, 0, 1, 1], [], []>} : vector<64x16xbf16>, vector<16x10xbf16>, vector<64x10xf32> -> vector<64x10xf32>
    %c0_9 = arith.constant 0 : index
    %c0_10 = arith.constant 0 : index
    %10 = vector.load %arg5[%c0_9, %c0_10] : memref<1x10xf32, #tpu.memory_space<vmem>>, vector<1x10xf32>
    %11 = vector.broadcast %10 : vector<1x10xf32> to vector<64x10xf32>
    %12 = arith.addf %9, %11 : vector<64x10xf32>
    %cst_11 = arith.constant 0.000000e+00 : f32
    %13 = vector.broadcast %cst_11 : f32 to vector<10x10x10xf32>
    %c0_12 = arith.constant 0 : index
    %c0_13 = arith.constant 0 : index
    %c0_14 = arith.constant 0 : index
    %14 = vector.load %arg14[%c0_12, %c0_13, %c0_14] : memref<10x10x10xf32, #tpu.memory_space<vmem>>, vector<10x10x10xf32>
    tpu.vector_store %arg14[%c0_12, %c0_13, %c0_14], %13 {strides = array<i32>} : memref<10x10x10xf32, #tpu.memory_space<vmem>>, vector<10x10x10xf32>,
    %15 = vector.shape_cast %7 : vector<64x10xf32> to vector<8x8x10xf32>
    %c1 = arith.constant 1 : index
    %c1_15 = arith.constant 1 : index
    %c0_16 = arith.constant 0 : index
    %16 = vector.load %arg14[%c1, %c1_15, %c0_16] : memref<10x10x10xf32, #tpu.memory_space<vmem>>, vector<8x8x10xf32>
    tpu.vector_store %arg14[%c1, %c1_15, %c0_16], %15 {strides = array<i32>} : memref<10x10x10xf32, #tpu.memory_space<vmem>>, vector<8x8x10xf32>,
    %cst_17 = arith.constant 0.000000e+00 : f32
    %17 = vector.broadcast %cst_17 : f32 to vector<8x8x10xf32>
    %c0_18 = arith.constant 0 : index
    %c0_19 = arith.constant 0 : index
    %c0_20 = arith.constant 0 : index
    %18 = vector.load %arg14[%c0_18, %c0_19, %c0_20] : memref<10x10x10xf32, #tpu.memory_space<vmem>>, vector<8x8x10xf32>
    %c0_21 = arith.constant 0 : index
    %c0_22 = arith.constant 0 : index
    %c0_23 = arith.constant 0 : index
    %19 = vector.load %arg6[%c0_21, %c0_22, %c0_23] : memref<9x1x10xf32, #tpu.memory_space<vmem>>, vector<1x1x10xf32>
    %20 = vector.shape_cast %19 : vector<1x1x10xf32> to vector<1x10xf32>
    %21 = vector.shape_cast %20 : vector<1x10xf32> to vector<1x1x10xf32>
    %22 = vector.broadcast %21 : vector<1x1x10xf32> to vector<8x8x10xf32>
    %23 = arith.mulf %18, %22 : vector<8x8x10xf32>
    %24 = arith.addf %17, %23 : vector<8x8x10xf32>
    %c0_24 = arith.constant 0 : index
    %c1_25 = arith.constant 1 : index
    %c0_26 = arith.constant 0 : index
    %25 = vector.load %arg14[%c0_24, %c1_25, %c0_26] : memref<10x10x10xf32, #tpu.memory_space<vmem>>, vector<8x8x10xf32>
    %c1_27 = arith.constant 1 : index
    %c0_28 = arith.constant 0 : index
    %c0_29 = arith.constant 0 : index
    %26 = vector.load %arg6[%c1_27, %c0_28, %c0_29] : memref<9x1x10xf32, #tpu.memory_space<vmem>>, vector<1x1x10xf32>
    %27 = vector.shape_cast %26 : vector<1x1x10xf32> to vector<1x10xf32>
    %28 = vector.shape_cast %27 : vector<1x10xf32> to vector<1x1x10xf32>
    %29 = vector.broadcast %28 : vector<1x1x10xf32> to vector<8x8x10xf32>
    %30 = arith.mulf %25, %29 : vector<8x8x10xf32>
    %31 = arith.addf %24, %30 : vector<8x8x10xf32>
    %c0_30 = arith.constant 0 : index
    %c2 = arith.constant 2 : index
    %c0_31 = arith.constant 0 : index
    %32 = vector.load %arg14[%c0_30, %c2, %c0_31] : memref<10x10x10xf32, #tpu.memory_space<vmem>>, vector<8x8x10xf32>
    %c2_32 = arith.constant 2 : index
    %c0_33 = arith.constant 0 : index
    %c0_34 = arith.constant 0 : index
    %33 = vector.load %arg6[%c2_32, %c0_33, %c0_34] : memref<9x1x10xf32, #tpu.memory_space<vmem>>, vector<1x1x10xf32>
    %34 = vector.shape_cast %33 : vector<1x1x10xf32> to vector<1x10xf32>
    %35 = vector.shape_cast %34 : vector<1x10xf32> to vector<1x1x10xf32>
    %36 = vector.broadcast %35 : vector<1x1x10xf32> to vector<8x8x10xf32>
    %37 = arith.mulf %32, %36 : vector<8x8x10xf32>
    %38 = arith.addf %31, %37 : vector<8x8x10xf32>
    %c1_35 = arith.constant 1 : index
    %c0_36 = arith.constant 0 : index
    %c0_37 = arith.constant 0 : index
    %39 = vector.load %arg14[%c1_35, %c0_36, %c0_37] : memref<10x10x10xf32, #tpu.memory_space<vmem>>, vector<8x8x10xf32>
    %c3 = arith.constant 3 : index
    %c0_38 = arith.constant 0 : index
    %c0_39 = arith.constant 0 : index
    %40 = vector.load %arg6[%c3, %c0_38, %c0_39] : memref<9x1x10xf32, #tpu.memory_space<vmem>>, vector<1x1x10xf32>
    %41 = vector.shape_cast %40 : vector<1x1x10xf32> to vector<1x10xf32>
    %42 = vector.shape_cast %41 : vector<1x10xf32> to vector<1x1x10xf32>
    %43 = vector.broadcast %42 : vector<1x1x10xf32> to vector<8x8x10xf32>
    %44 = arith.mulf %39, %43 : vector<8x8x10xf32>
    %45 = arith.addf %38, %44 : vector<8x8x10xf32>
    %c1_40 = arith.constant 1 : index
    %c1_41 = arith.constant 1 : index
    %c0_42 = arith.constant 0 : index
    %46 = vector.load %arg14[%c1_40, %c1_41, %c0_42] : memref<10x10x10xf32, #tpu.memory_space<vmem>>, vector<8x8x10xf32>
    %c4 = arith.constant 4 : index
    %c0_43 = arith.constant 0 : index
    %c0_44 = arith.constant 0 : index
    %47 = vector.load %arg6[%c4, %c0_43, %c0_44] : memref<9x1x10xf32, #tpu.memory_space<vmem>>, vector<1x1x10xf32>
    %48 = vector.shape_cast %47 : vector<1x1x10xf32> to vector<1x10xf32>
    %49 = vector.shape_cast %48 : vector<1x10xf32> to vector<1x1x10xf32>
    %50 = vector.broadcast %49 : vector<1x1x10xf32> to vector<8x8x10xf32>
    %51 = arith.mulf %46, %50 : vector<8x8x10xf32>
    %52 = arith.addf %45, %51 : vector<8x8x10xf32>
    %c1_45 = arith.constant 1 : index
    %c2_46 = arith.constant 2 : index
    %c0_47 = arith.constant 0 : index
    %53 = vector.load %arg14[%c1_45, %c2_46, %c0_47] : memref<10x10x10xf32, #tpu.memory_space<vmem>>, vector<8x8x10xf32>
    %c5 = arith.constant 5 : index
    %c0_48 = arith.constant 0 : index
    %c0_49 = arith.constant 0 : index
    %54 = vector.load %arg6[%c5, %c0_48, %c0_49] : memref<9x1x10xf32, #tpu.memory_space<vmem>>, vector<1x1x10xf32>
    %55 = vector.shape_cast %54 : vector<1x1x10xf32> to vector<1x10xf32>
    %56 = vector.shape_cast %55 : vector<1x10xf32> to vector<1x1x10xf32>
    %57 = vector.broadcast %56 : vector<1x1x10xf32> to vector<8x8x10xf32>
    %58 = arith.mulf %53, %57 : vector<8x8x10xf32>
    %59 = arith.addf %52, %58 : vector<8x8x10xf32>
    %c2_50 = arith.constant 2 : index
    %c0_51 = arith.constant 0 : index
    %c0_52 = arith.constant 0 : index
    %60 = vector.load %arg14[%c2_50, %c0_51, %c0_52] : memref<10x10x10xf32, #tpu.memory_space<vmem>>, vector<8x8x10xf32>
    %c6 = arith.constant 6 : index
    %c0_53 = arith.constant 0 : index
    %c0_54 = arith.constant 0 : index
    %61 = vector.load %arg6[%c6, %c0_53, %c0_54] : memref<9x1x10xf32, #tpu.memory_space<vmem>>, vector<1x1x10xf32>
    %62 = vector.shape_cast %61 : vector<1x1x10xf32> to vector<1x10xf32>
    %63 = vector.shape_cast %62 : vector<1x10xf32> to vector<1x1x10xf32>
    %64 = vector.broadcast %63 : vector<1x1x10xf32> to vector<8x8x10xf32>
    %65 = arith.mulf %60, %64 : vector<8x8x10xf32>
    %66 = arith.addf %59, %65 : vector<8x8x10xf32>
    %c2_55 = arith.constant 2 : index
    %c1_56 = arith.constant 1 : index
    %c0_57 = arith.constant 0 : index
    %67 = vector.load %arg14[%c2_55, %c1_56, %c0_57] : memref<10x10x10xf32, #tpu.memory_space<vmem>>, vector<8x8x10xf32>
    %c7 = arith.constant 7 : index
    %c0_58 = arith.constant 0 : index
    %c0_59 = arith.constant 0 : index
    %68 = vector.load %arg6[%c7, %c0_58, %c0_59] : memref<9x1x10xf32, #tpu.memory_space<vmem>>, vector<1x1x10xf32>
    %69 = vector.shape_cast %68 : vector<1x1x10xf32> to vector<1x10xf32>
    %70 = vector.shape_cast %69 : vector<1x10xf32> to vector<1x1x10xf32>
    %71 = vector.broadcast %70 : vector<1x1x10xf32> to vector<8x8x10xf32>
    %72 = arith.mulf %67, %71 : vector<8x8x10xf32>
    %73 = arith.addf %66, %72 : vector<8x8x10xf32>
    %c2_60 = arith.constant 2 : index
    %c2_61 = arith.constant 2 : index
    %c0_62 = arith.constant 0 : index
    %74 = vector.load %arg14[%c2_60, %c2_61, %c0_62] : memref<10x10x10xf32, #tpu.memory_space<vmem>>, vector<8x8x10xf32>
    %c8 = arith.constant 8 : index
    %c0_63 = arith.constant 0 : index
    %c0_64 = arith.constant 0 : index
    %75 = vector.load %arg6[%c8, %c0_63, %c0_64] : memref<9x1x10xf32, #tpu.memory_space<vmem>>, vector<1x1x10xf32>
    %76 = vector.shape_cast %75 : vector<1x1x10xf32> to vector<1x10xf32>
    %77 = vector.shape_cast %76 : vector<1x10xf32> to vector<1x1x10xf32>
    %78 = vector.broadcast %77 : vector<1x1x10xf32> to vector<8x8x10xf32>
    %79 = arith.mulf %74, %78 : vector<8x8x10xf32>
    %80 = arith.addf %73, %79 : vector<8x8x10xf32>
    %c0_65 = arith.constant 0 : index
    %c0_66 = arith.constant 0 : index
    %81 = vector.load %arg7[%c0_65, %c0_66] : memref<1x10xf32, #tpu.memory_space<vmem>>, vector<1x10xf32>
    %82 = vector.shape_cast %81 : vector<1x10xf32> to vector<1x1x10xf32>
    %83 = vector.broadcast %82 : vector<1x1x10xf32> to vector<8x8x10xf32>
    %84 = arith.addf %80, %83 : vector<8x8x10xf32>
    %cst_67 = arith.constant 5.000000e-01 : f32
    %85 = vector.broadcast %cst_67 : f32 to vector<8x8x10xf32>
    %86 = arith.mulf %85, %84 : vector<8x8x10xf32>
    %cst_68 = arith.constant 4.471500e-02 : f32
    %87 = vector.broadcast %cst_68 : f32 to vector<8x8x10xf32>
    %88 = arith.mulf %87, %84 : vector<8x8x10xf32>
    %89 = arith.mulf %88, %84 : vector<8x8x10xf32>
    %90 = arith.mulf %89, %84 : vector<8x8x10xf32>
    %91 = arith.addf %84, %90 : vector<8x8x10xf32>
    %cst_69 = arith.constant 0.797884583 : f32
    %92 = vector.broadcast %cst_69 : f32 to vector<8x8x10xf32>
    %93 = arith.mulf %92, %91 : vector<8x8x10xf32>
    %94 = math.tanh %93 : vector<8x8x10xf32>
    %cst_70 = arith.constant 1.000000e+00 : f32
    %95 = vector.broadcast %cst_70 : f32 to vector<8x8x10xf32>
    %96 = arith.addf %95, %94 : vector<8x8x10xf32>
    %97 = arith.mulf %86, %96 : vector<8x8x10xf32>
    %98 = vector.shape_cast %97 : vector<8x8x10xf32> to vector<64x10xf32>
    %99 = arith.mulf %98, %12 : vector<64x10xf32>
    %100 = arith.truncf %99 : vector<64x10xf32> to vector<64x10xbf16>
    %c0_71 = arith.constant 0 : index
    %c0_72 = arith.constant 0 : index
    %101 = vector.load %arg8[%c0_71, %c0_72] : memref<10x16xbf16, #tpu.memory_space<vmem>>, vector<10x16xbf16>
    %cst_73 = arith.constant dense<0.000000e+00> : vector<64x16xf32>
    %102 = tpu.matmul %100, %101, %cst_73 {dimension_numbers = #tpu.dot_dimension_numbers<[1], [0], [0], [1], [0, 0, 1, 1], [], []>} : vector<64x10xbf16>, vector<10x16xbf16>, vector<64x16xf32> -> vector<64x16xf32>
    %c0_74 = arith.constant 0 : index
    %c0_75 = arith.constant 0 : index
    %103 = vector.load %arg9[%c0_74, %c0_75] : memref<1x16xf32, #tpu.memory_space<vmem>>, vector<1x16xf32>
    %104 = vector.broadcast %103 : vector<1x16xf32> to vector<64x16xf32>
    %105 = arith.addf %102, %104 : vector<64x16xf32>
    %106 = arith.addf %105, %2 : vector<64x16xf32>
    %cst_76 = arith.constant 0.000000e+00 : f32
    %107 = vector.broadcast %cst_76 : f32 to vector<10x10x16xf32>
    %c0_77 = arith.constant 0 : index
    %c0_78 = arith.constant 0 : index
    %c0_79 = arith.constant 0 : index
    %108 = vector.load %arg15[%c0_77, %c0_78, %c0_79] : memref<10x10x16xf32, #tpu.memory_space<vmem>>, vector<10x10x16xf32>
    tpu.vector_store %arg15[%c0_77, %c0_78, %c0_79], %107 {strides = array<i32>} : memref<10x10x16xf32, #tpu.memory_space<vmem>>, vector<10x10x16xf32>,
    %109 = vector.shape_cast %106 : vector<64x16xf32> to vector<8x8x16xf32>
    %c1_80 = arith.constant 1 : index
    %c1_81 = arith.constant 1 : index
    %c0_82 = arith.constant 0 : index
    %110 = vector.load %arg15[%c1_80, %c1_81, %c0_82] : memref<10x10x16xf32, #tpu.memory_space<vmem>>, vector<8x8x16xf32>
    tpu.vector_store %arg15[%c1_80, %c1_81, %c0_82], %109 {strides = array<i32>} : memref<10x10x16xf32, #tpu.memory_space<vmem>>, vector<8x8x16xf32>,
    %cst_83 = arith.constant 0.000000e+00 : f32
    %111 = vector.broadcast %cst_83 : f32 to vector<64x16xf32>
    %c0_84 = arith.constant 0 : index
    %c0_85 = arith.constant 0 : index
    %c0_86 = arith.constant 0 : index
    %112 = vector.load %arg15[%c0_84, %c0_85, %c0_86] : memref<10x10x16xf32, #tpu.memory_space<vmem>>, vector<8x8x16xf32>
    %113 = vector.shape_cast %112 : vector<8x8x16xf32> to vector<64x16xf32>
    %114 = arith.truncf %113 : vector<64x16xf32> to vector<64x16xbf16>
    %c0_87 = arith.constant 0 : index
    %c0_88 = arith.constant 0 : index
    %c0_89 = arith.constant 0 : index
    %115 = vector.load %arg10[%c0_87, %c0_88, %c0_89] : memref<9x16x16xbf16, #tpu.memory_space<vmem>>, vector<1x16x16xbf16>
    %116 = vector.shape_cast %115 : vector<1x16x16xbf16> to vector<16x16xbf16>
    %cst_90 = arith.constant dense<0.000000e+00> : vector<64x16xf32>
    %117 = tpu.matmul %114, %116, %cst_90 {dimension_numbers = #tpu.dot_dimension_numbers<[1], [0], [0], [1], [0, 0, 1, 1], [], []>} : vector<64x16xbf16>, vector<16x16xbf16>, vector<64x16xf32> -> vector<64x16xf32>
    %118 = arith.addf %111, %117 : vector<64x16xf32>
    %c0_91 = arith.constant 0 : index
    %c1_92 = arith.constant 1 : index
    %c0_93 = arith.constant 0 : index
    %119 = vector.load %arg15[%c0_91, %c1_92, %c0_93] : memref<10x10x16xf32, #tpu.memory_space<vmem>>, vector<8x8x16xf32>
    %120 = vector.shape_cast %119 : vector<8x8x16xf32> to vector<64x16xf32>
    %121 = arith.truncf %120 : vector<64x16xf32> to vector<64x16xbf16>
    %c1_94 = arith.constant 1 : index
    %c0_95 = arith.constant 0 : index
    %c0_96 = arith.constant 0 : index
    %122 = vector.load %arg10[%c1_94, %c0_95, %c0_96] : memref<9x16x16xbf16, #tpu.memory_space<vmem>>, vector<1x16x16xbf16>
    %123 = vector.shape_cast %122 : vector<1x16x16xbf16> to vector<16x16xbf16>
    %cst_97 = arith.constant dense<0.000000e+00> : vector<64x16xf32>
    %124 = tpu.matmul %121, %123, %cst_97 {dimension_numbers = #tpu.dot_dimension_numbers<[1], [0], [0], [1], [0, 0, 1, 1], [], []>} : vector<64x16xbf16>, vector<16x16xbf16>, vector<64x16xf32> -> vector<64x16xf32>
    %125 = arith.addf %118, %124 : vector<64x16xf32>
    %c0_98 = arith.constant 0 : index
    %c2_99 = arith.constant 2 : index
    %c0_100 = arith.constant 0 : index
    %126 = vector.load %arg15[%c0_98, %c2_99, %c0_100] : memref<10x10x16xf32, #tpu.memory_space<vmem>>, vector<8x8x16xf32>
    %127 = vector.shape_cast %126 : vector<8x8x16xf32> to vector<64x16xf32>
    %128 = arith.truncf %127 : vector<64x16xf32> to vector<64x16xbf16>
    %c2_101 = arith.constant 2 : index
    %c0_102 = arith.constant 0 : index
    %c0_103 = arith.constant 0 : index
    %129 = vector.load %arg10[%c2_101, %c0_102, %c0_103] : memref<9x16x16xbf16, #tpu.memory_space<vmem>>, vector<1x16x16xbf16>
    %130 = vector.shape_cast %129 : vector<1x16x16xbf16> to vector<16x16xbf16>
    %cst_104 = arith.constant dense<0.000000e+00> : vector<64x16xf32>
    %131 = tpu.matmul %128, %130, %cst_104 {dimension_numbers = #tpu.dot_dimension_numbers<[1], [0], [0], [1], [0, 0, 1, 1], [], []>} : vector<64x16xbf16>, vector<16x16xbf16>, vector<64x16xf32> -> vector<64x16xf32>
    %132 = arith.addf %125, %131 : vector<64x16xf32>
    %c1_105 = arith.constant 1 : index
    %c0_106 = arith.constant 0 : index
    %c0_107 = arith.constant 0 : index
    %133 = vector.load %arg15[%c1_105, %c0_106, %c0_107] : memref<10x10x16xf32, #tpu.memory_space<vmem>>, vector<8x8x16xf32>
    %134 = vector.shape_cast %133 : vector<8x8x16xf32> to vector<64x16xf32>
    %135 = arith.truncf %134 : vector<64x16xf32> to vector<64x16xbf16>
    %c3_108 = arith.constant 3 : index
    %c0_109 = arith.constant 0 : index
    %c0_110 = arith.constant 0 : index
    %136 = vector.load %arg10[%c3_108, %c0_109, %c0_110] : memref<9x16x16xbf16, #tpu.memory_space<vmem>>, vector<1x16x16xbf16>
    %137 = vector.shape_cast %136 : vector<1x16x16xbf16> to vector<16x16xbf16>
    %cst_111 = arith.constant dense<0.000000e+00> : vector<64x16xf32>
    %138 = tpu.matmul %135, %137, %cst_111 {dimension_numbers = #tpu.dot_dimension_numbers<[1], [0], [0], [1], [0, 0, 1, 1], [], []>} : vector<64x16xbf16>, vector<16x16xbf16>, vector<64x16xf32> -> vector<64x16xf32>
    %139 = arith.addf %132, %138 : vector<64x16xf32>
    %c1_112 = arith.constant 1 : index
    %c1_113 = arith.constant 1 : index
    %c0_114 = arith.constant 0 : index
    %140 = vector.load %arg15[%c1_112, %c1_113, %c0_114] : memref<10x10x16xf32, #tpu.memory_space<vmem>>, vector<8x8x16xf32>
    %141 = vector.shape_cast %140 : vector<8x8x16xf32> to vector<64x16xf32>
    %142 = arith.truncf %141 : vector<64x16xf32> to vector<64x16xbf16>
    %c4_115 = arith.constant 4 : index
    %c0_116 = arith.constant 0 : index
    %c0_117 = arith.constant 0 : index
    %143 = vector.load %arg10[%c4_115, %c0_116, %c0_117] : memref<9x16x16xbf16, #tpu.memory_space<vmem>>, vector<1x16x16xbf16>
    %144 = vector.shape_cast %143 : vector<1x16x16xbf16> to vector<16x16xbf16>
    %cst_118 = arith.constant dense<0.000000e+00> : vector<64x16xf32>
    %145 = tpu.matmul %142, %144, %cst_118 {dimension_numbers = #tpu.dot_dimension_numbers<[1], [0], [0], [1], [0, 0, 1, 1], [], []>} : vector<64x16xbf16>, vector<16x16xbf16>, vector<64x16xf32> -> vector<64x16xf32>
    %146 = arith.addf %139, %145 : vector<64x16xf32>
    %c1_119 = arith.constant 1 : index
    %c2_120 = arith.constant 2 : index
    %c0_121 = arith.constant 0 : index
    %147 = vector.load %arg15[%c1_119, %c2_120, %c0_121] : memref<10x10x16xf32, #tpu.memory_space<vmem>>, vector<8x8x16xf32>
    %148 = vector.shape_cast %147 : vector<8x8x16xf32> to vector<64x16xf32>
    %149 = arith.truncf %148 : vector<64x16xf32> to vector<64x16xbf16>
    %c5_122 = arith.constant 5 : index
    %c0_123 = arith.constant 0 : index
    %c0_124 = arith.constant 0 : index
    %150 = vector.load %arg10[%c5_122, %c0_123, %c0_124] : memref<9x16x16xbf16, #tpu.memory_space<vmem>>, vector<1x16x16xbf16>
    %151 = vector.shape_cast %150 : vector<1x16x16xbf16> to vector<16x16xbf16>
    %cst_125 = arith.constant dense<0.000000e+00> : vector<64x16xf32>
    %152 = tpu.matmul %149, %151, %cst_125 {dimension_numbers = #tpu.dot_dimension_numbers<[1], [0], [0], [1], [0, 0, 1, 1], [], []>} : vector<64x16xbf16>, vector<16x16xbf16>, vector<64x16xf32> -> vector<64x16xf32>
    %153 = arith.addf %146, %152 : vector<64x16xf32>
    %c2_126 = arith.constant 2 : index
    %c0_127 = arith.constant 0 : index
    %c0_128 = arith.constant 0 : index
    %154 = vector.load %arg15[%c2_126, %c0_127, %c0_128] : memref<10x10x16xf32, #tpu.memory_space<vmem>>, vector<8x8x16xf32>
    %155 = vector.shape_cast %154 : vector<8x8x16xf32> to vector<64x16xf32>
    %156 = arith.truncf %155 : vector<64x16xf32> to vector<64x16xbf16>
    %c6_129 = arith.constant 6 : index
    %c0_130 = arith.constant 0 : index
    %c0_131 = arith.constant 0 : index
    %157 = vector.load %arg10[%c6_129, %c0_130, %c0_131] : memref<9x16x16xbf16, #tpu.memory_space<vmem>>, vector<1x16x16xbf16>
    %158 = vector.shape_cast %157 : vector<1x16x16xbf16> to vector<16x16xbf16>
    %cst_132 = arith.constant dense<0.000000e+00> : vector<64x16xf32>
    %159 = tpu.matmul %156, %158, %cst_132 {dimension_numbers = #tpu.dot_dimension_numbers<[1], [0], [0], [1], [0, 0, 1, 1], [], []>} : vector<64x16xbf16>, vector<16x16xbf16>, vector<64x16xf32> -> vector<64x16xf32>
    %160 = arith.addf %153, %159 : vector<64x16xf32>
    %c2_133 = arith.constant 2 : index
    %c1_134 = arith.constant 1 : index
    %c0_135 = arith.constant 0 : index
    %161 = vector.load %arg15[%c2_133, %c1_134, %c0_135] : memref<10x10x16xf32, #tpu.memory_space<vmem>>, vector<8x8x16xf32>
    %162 = vector.shape_cast %161 : vector<8x8x16xf32> to vector<64x16xf32>
    %163 = arith.truncf %162 : vector<64x16xf32> to vector<64x16xbf16>
    %c7_136 = arith.constant 7 : index
    %c0_137 = arith.constant 0 : index
    %c0_138 = arith.constant 0 : index
    %164 = vector.load %arg10[%c7_136, %c0_137, %c0_138] : memref<9x16x16xbf16, #tpu.memory_space<vmem>>, vector<1x16x16xbf16>
    %165 = vector.shape_cast %164 : vector<1x16x16xbf16> to vector<16x16xbf16>
    %cst_139 = arith.constant dense<0.000000e+00> : vector<64x16xf32>
    %166 = tpu.matmul %163, %165, %cst_139 {dimension_numbers = #tpu.dot_dimension_numbers<[1], [0], [0], [1], [0, 0, 1, 1], [], []>} : vector<64x16xbf16>, vector<16x16xbf16>, vector<64x16xf32> -> vector<64x16xf32>
    %167 = arith.addf %160, %166 : vector<64x16xf32>
    %c2_140 = arith.constant 2 : index
    %c2_141 = arith.constant 2 : index
    %c0_142 = arith.constant 0 : index
    %168 = vector.load %arg15[%c2_140, %c2_141, %c0_142] : memref<10x10x16xf32, #tpu.memory_space<vmem>>, vector<8x8x16xf32>
    %169 = vector.shape_cast %168 : vector<8x8x16xf32> to vector<64x16xf32>
    %170 = arith.truncf %169 : vector<64x16xf32> to vector<64x16xbf16>
    %c8_143 = arith.constant 8 : index
    %c0_144 = arith.constant 0 : index
    %c0_145 = arith.constant 0 : index
    %171 = vector.load %arg10[%c8_143, %c0_144, %c0_145] : memref<9x16x16xbf16, #tpu.memory_space<vmem>>, vector<1x16x16xbf16>
    %172 = vector.shape_cast %171 : vector<1x16x16xbf16> to vector<16x16xbf16>
    %cst_146 = arith.constant dense<0.000000e+00> : vector<64x16xf32>
    %173 = tpu.matmul %170, %172, %cst_146 {dimension_numbers = #tpu.dot_dimension_numbers<[1], [0], [0], [1], [0, 0, 1, 1], [], []>} : vector<64x16xbf16>, vector<16x16xbf16>, vector<64x16xf32> -> vector<64x16xf32>
    %174 = arith.addf %167, %173 : vector<64x16xf32>
    %c0_147 = arith.constant 0 : index
    %c0_148 = arith.constant 0 : index
    %175 = vector.load %arg11[%c0_147, %c0_148] : memref<1x16xf32, #tpu.memory_space<vmem>>, vector<1x16xf32>
    %176 = vector.broadcast %175 : vector<1x16xf32> to vector<64x16xf32>
    %177 = arith.mulf %174, %176 : vector<64x16xf32>
    %c0_149 = arith.constant 0 : index
    %c0_150 = arith.constant 0 : index
    %178 = vector.load %arg12[%c0_149, %c0_150] : memref<1x16xf32, #tpu.memory_space<vmem>>, vector<1x16xf32>
    %179 = vector.broadcast %178 : vector<1x16xf32> to vector<64x16xf32>
    %180 = arith.addf %177, %179 : vector<64x16xf32>
    %cst_151 = arith.constant 0.000000e+00 : f32
    %181 = vector.broadcast %cst_151 : f32 to vector<64x16xf32>
    %182 = arith.maximumf %180, %181 : vector<64x16xf32>
    %c0_152 = arith.constant 0 : index
    %c0_153 = arith.constant 0 : index
    %c0_154 = arith.constant 0 : index
    %183 = vector.load %arg13[%c0_152, %c0_153, %c0_154] : memref<1x64x16xf32, #tpu.memory_space<vmem>>, vector<1x64x16xf32>
    %184 = vector.shape_cast %183 : vector<1x64x16xf32> to vector<64x16xf32>
    %185 = vector.shape_cast %182 : vector<64x16xf32> to vector<1x64x16xf32>
    tpu.vector_store %arg13[%c0_152, %c0_153, %c0_154], %185 {strides = array<i32>} : memref<1x64x16xf32, #tpu.memory_space<vmem>>, vector<1x64x16xf32>,
    return
  }
  func.func @transform_0(%arg0: i32) -> (i32, i32, i32) {
    %c0_i32 = arith.constant 0 : i32
    %c0_i32_0 = arith.constant 0 : i32
    %c0_i32_1 = arith.constant 0 : i32
    return %arg0, %c0_i32, %c0_i32_0 : i32, i32, i32
  }
  func.func @transform_1(%arg0: i32) -> (i32, i32) {
    %c0_i32 = arith.constant 0 : i32
    %c0_i32_0 = arith.constant 0 : i32
    %c0_i32_1 = arith.constant 0 : i32
    return %c0_i32, %c0_i32_0 : i32, i32
  }
  func.func @transform_2(%arg0: i32) -> (i32, i32) {
    %c0_i32 = arith.constant 0 : i32
    %c0_i32_0 = arith.constant 0 : i32
    %c0_i32_1 = arith.constant 0 : i32
    return %c0_i32, %c0_i32_0 : i32, i32
  }
  func.func @transform_3(%arg0: i32) -> (i32, i32) {
    %c0_i32 = arith.constant 0 : i32
    %c0_i32_0 = arith.constant 0 : i32
    %c0_i32_1 = arith.constant 0 : i32
    return %c0_i32, %c0_i32_0 : i32, i32
  }
  func.func @transform_4(%arg0: i32) -> (i32, i32) {
    %c0_i32 = arith.constant 0 : i32
    %c0_i32_0 = arith.constant 0 : i32
    %c0_i32_1 = arith.constant 0 : i32
    return %c0_i32, %c0_i32_0 : i32, i32
  }
  func.func @transform_5(%arg0: i32) -> (i32, i32, i32) {
    %c0_i32 = arith.constant 0 : i32
    %c0_i32_0 = arith.constant 0 : i32
    %c0_i32_1 = arith.constant 0 : i32
    %c0_i32_2 = arith.constant 0 : i32
    return %c0_i32, %c0_i32_0, %c0_i32_1 : i32, i32, i32
  }
  func.func @transform_6(%arg0: i32) -> (i32, i32) {
    %c0_i32 = arith.constant 0 : i32
    %c0_i32_0 = arith.constant 0 : i32
    %c0_i32_1 = arith.constant 0 : i32
    return %c0_i32, %c0_i32_0 : i32, i32
  }
  func.func @transform_7(%arg0: i32) -> (i32, i32) {
    %c0_i32 = arith.constant 0 : i32
    %c0_i32_0 = arith.constant 0 : i32
    %c0_i32_1 = arith.constant 0 : i32
    return %c0_i32, %c0_i32_0 : i32, i32
  }
  func.func @transform_8(%arg0: i32) -> (i32, i32) {
    %c0_i32 = arith.constant 0 : i32
    %c0_i32_0 = arith.constant 0 : i32
    %c0_i32_1 = arith.constant 0 : i32
    return %c0_i32, %c0_i32_0 : i32, i32
  }
  func.func @transform_9(%arg0: i32) -> (i32, i32, i32) {
    %c0_i32 = arith.constant 0 : i32
    %c0_i32_0 = arith.constant 0 : i32
    %c0_i32_1 = arith.constant 0 : i32
    %c0_i32_2 = arith.constant 0 : i32
    return %c0_i32, %c0_i32_0, %c0_i32_1 : i32, i32, i32
  }
  func.func @transform_10(%arg0: i32) -> (i32, i32) {
    %c0_i32 = arith.constant 0 : i32
    %c0_i32_0 = arith.constant 0 : i32
    %c0_i32_1 = arith.constant 0 : i32
    return %c0_i32, %c0_i32_0 : i32, i32
  }
  func.func @transform_11(%arg0: i32) -> (i32, i32) {
    %c0_i32 = arith.constant 0 : i32
    %c0_i32_0 = arith.constant 0 : i32
    %c0_i32_1 = arith.constant 0 : i32
    return %c0_i32, %c0_i32_0 : i32, i32
  }
  func.func @transform_12(%arg0: i32) -> (i32, i32, i32) {
    %c0_i32 = arith.constant 0 : i32
    %c0_i32_0 = arith.constant 0 : i32
    %c0_i32_1 = arith.constant 0 : i32
    return %arg0, %c0_i32, %c0_i32_0 : i32, i32, i32
  }
}

module attributes {stable_mosaic.version = 11 : i64} {
  func.func @kernel(%arg0: i32, %arg1: memref<1x8x2x8x8xf32, #tpu.memory_space<vmem>>, %arg2: memref<9x4x16xbf16, #tpu.memory_space<vmem>>, %arg3: memref<1x16xf32, #tpu.memory_space<vmem>>, %arg4: memref<1x16xf32, #tpu.memory_space<vmem>>, %arg5: memref<1x64x16xbf16, #tpu.memory_space<vmem>>, %arg6: memref<10x10x4xf32, #tpu.memory_space<vmem>>) attributes {dimension_semantics = [#tpu.dimension_semantics<parallel>], iteration_bounds = array<i64: 2>, scalar_prefetch = 0 : i64, scratch_operands = 1 : i64, tpu.core_type = #tpu.core_type<tc>, window_params = [{transform_indices = @transform_0, window_bounds = array<i64: 1, 8, 2, 8, 8>}, {pipeline_mode = #tpu.pipeline_mode<synchronous>, transform_indices = @transform_1, window_bounds = array<i64: 9, 4, 16>}, {pipeline_mode = #tpu.pipeline_mode<synchronous>, transform_indices = @transform_2, window_bounds = array<i64: 1, 16>}, {pipeline_mode = #tpu.pipeline_mode<synchronous>, transform_indices = @transform_3, window_bounds = array<i64: 1, 16>}, {transform_indices = @transform_4, window_bounds = array<i64: 1, 64, 16>}]} {
    %c0 = arith.constant 0 : index
    %c0_0 = arith.constant 0 : index
    %c0_1 = arith.constant 0 : index
    %c0_2 = arith.constant 0 : index
    %c0_3 = arith.constant 0 : index
    %0 = vector.load %arg1[%c0, %c0_0, %c0_1, %c0_2, %c0_3] : memref<1x8x2x8x8xf32, #tpu.memory_space<vmem>>, vector<1x8x1x8x8xf32>
    %1 = vector.shape_cast %0 : vector<1x8x1x8x8xf32> to vector<8x8x8xf32>
    %c0_4 = arith.constant 0 : index
    %c0_5 = arith.constant 0 : index
    %c1 = arith.constant 1 : index
    %c0_6 = arith.constant 0 : index
    %c0_7 = arith.constant 0 : index
    %2 = vector.load %arg1[%c0_4, %c0_5, %c1, %c0_6, %c0_7] : memref<1x8x2x8x8xf32, #tpu.memory_space<vmem>>, vector<1x8x1x8x8xf32>
    %3 = vector.shape_cast %2 : vector<1x8x1x8x8xf32> to vector<8x8x8xf32>
    %4 = arith.maximumf %1, %3 : vector<8x8x8xf32>
    %5 = vector.extract_strided_slice %4 {offsets = [0, 0, 0], sizes = [8, 8, 4], strides = [1, 1, 1]} : vector<8x8x8xf32> to vector<8x8x4xf32>
    %6 = vector.extract_strided_slice %4 {offsets = [0, 0, 4], sizes = [8, 8, 4], strides = [1, 1, 1]} : vector<8x8x8xf32> to vector<8x8x4xf32>
    %7 = arith.maximumf %5, %6 : vector<8x8x4xf32>
    %cst = arith.constant 0.000000e+00 : f32
    %8 = vector.broadcast %cst : f32 to vector<10x10x4xf32>
    %c0_8 = arith.constant 0 : index
    %c0_9 = arith.constant 0 : index
    %c0_10 = arith.constant 0 : index
    %9 = vector.load %arg6[%c0_8, %c0_9, %c0_10] : memref<10x10x4xf32, #tpu.memory_space<vmem>>, vector<10x10x4xf32>
    tpu.vector_store %arg6[%c0_8, %c0_9, %c0_10], %8 {strides = array<i32>} : memref<10x10x4xf32, #tpu.memory_space<vmem>>, vector<10x10x4xf32>,
    %c1_11 = arith.constant 1 : index
    %c1_12 = arith.constant 1 : index
    %c0_13 = arith.constant 0 : index
    %10 = vector.load %arg6[%c1_11, %c1_12, %c0_13] : memref<10x10x4xf32, #tpu.memory_space<vmem>>, vector<8x8x4xf32>
    tpu.vector_store %arg6[%c1_11, %c1_12, %c0_13], %7 {strides = array<i32>} : memref<10x10x4xf32, #tpu.memory_space<vmem>>, vector<8x8x4xf32>,
    %cst_14 = arith.constant 0.000000e+00 : f32
    %11 = vector.broadcast %cst_14 : f32 to vector<64x16xf32>
    %c0_15 = arith.constant 0 : index
    %c0_16 = arith.constant 0 : index
    %c0_17 = arith.constant 0 : index
    %12 = vector.load %arg6[%c0_15, %c0_16, %c0_17] : memref<10x10x4xf32, #tpu.memory_space<vmem>>, vector<8x8x4xf32>
    %13 = vector.shape_cast %12 : vector<8x8x4xf32> to vector<64x4xf32>
    %14 = arith.truncf %13 : vector<64x4xf32> to vector<64x4xbf16>
    %c0_18 = arith.constant 0 : index
    %c0_19 = arith.constant 0 : index
    %c0_20 = arith.constant 0 : index
    %15 = vector.load %arg2[%c0_18, %c0_19, %c0_20] : memref<9x4x16xbf16, #tpu.memory_space<vmem>>, vector<1x4x16xbf16>
    %16 = vector.shape_cast %15 : vector<1x4x16xbf16> to vector<4x16xbf16>
    %cst_21 = arith.constant dense<0.000000e+00> : vector<64x16xf32>
    %17 = tpu.matmul %14, %16, %cst_21 {dimension_numbers = #tpu.dot_dimension_numbers<[1], [0], [0], [1], [0, 0, 1, 1], [], []>} : vector<64x4xbf16>, vector<4x16xbf16>, vector<64x16xf32> -> vector<64x16xf32>
    %18 = arith.addf %11, %17 : vector<64x16xf32>
    %c0_22 = arith.constant 0 : index
    %c1_23 = arith.constant 1 : index
    %c0_24 = arith.constant 0 : index
    %19 = vector.load %arg6[%c0_22, %c1_23, %c0_24] : memref<10x10x4xf32, #tpu.memory_space<vmem>>, vector<8x8x4xf32>
    %20 = vector.shape_cast %19 : vector<8x8x4xf32> to vector<64x4xf32>
    %21 = arith.truncf %20 : vector<64x4xf32> to vector<64x4xbf16>
    %c1_25 = arith.constant 1 : index
    %c0_26 = arith.constant 0 : index
    %c0_27 = arith.constant 0 : index
    %22 = vector.load %arg2[%c1_25, %c0_26, %c0_27] : memref<9x4x16xbf16, #tpu.memory_space<vmem>>, vector<1x4x16xbf16>
    %23 = vector.shape_cast %22 : vector<1x4x16xbf16> to vector<4x16xbf16>
    %cst_28 = arith.constant dense<0.000000e+00> : vector<64x16xf32>
    %24 = tpu.matmul %21, %23, %cst_28 {dimension_numbers = #tpu.dot_dimension_numbers<[1], [0], [0], [1], [0, 0, 1, 1], [], []>} : vector<64x4xbf16>, vector<4x16xbf16>, vector<64x16xf32> -> vector<64x16xf32>
    %25 = arith.addf %18, %24 : vector<64x16xf32>
    %c0_29 = arith.constant 0 : index
    %c2 = arith.constant 2 : index
    %c0_30 = arith.constant 0 : index
    %26 = vector.load %arg6[%c0_29, %c2, %c0_30] : memref<10x10x4xf32, #tpu.memory_space<vmem>>, vector<8x8x4xf32>
    %27 = vector.shape_cast %26 : vector<8x8x4xf32> to vector<64x4xf32>
    %28 = arith.truncf %27 : vector<64x4xf32> to vector<64x4xbf16>
    %c2_31 = arith.constant 2 : index
    %c0_32 = arith.constant 0 : index
    %c0_33 = arith.constant 0 : index
    %29 = vector.load %arg2[%c2_31, %c0_32, %c0_33] : memref<9x4x16xbf16, #tpu.memory_space<vmem>>, vector<1x4x16xbf16>
    %30 = vector.shape_cast %29 : vector<1x4x16xbf16> to vector<4x16xbf16>
    %cst_34 = arith.constant dense<0.000000e+00> : vector<64x16xf32>
    %31 = tpu.matmul %28, %30, %cst_34 {dimension_numbers = #tpu.dot_dimension_numbers<[1], [0], [0], [1], [0, 0, 1, 1], [], []>} : vector<64x4xbf16>, vector<4x16xbf16>, vector<64x16xf32> -> vector<64x16xf32>
    %32 = arith.addf %25, %31 : vector<64x16xf32>
    %c1_35 = arith.constant 1 : index
    %c0_36 = arith.constant 0 : index
    %c0_37 = arith.constant 0 : index
    %33 = vector.load %arg6[%c1_35, %c0_36, %c0_37] : memref<10x10x4xf32, #tpu.memory_space<vmem>>, vector<8x8x4xf32>
    %34 = vector.shape_cast %33 : vector<8x8x4xf32> to vector<64x4xf32>
    %35 = arith.truncf %34 : vector<64x4xf32> to vector<64x4xbf16>
    %c3 = arith.constant 3 : index
    %c0_38 = arith.constant 0 : index
    %c0_39 = arith.constant 0 : index
    %36 = vector.load %arg2[%c3, %c0_38, %c0_39] : memref<9x4x16xbf16, #tpu.memory_space<vmem>>, vector<1x4x16xbf16>
    %37 = vector.shape_cast %36 : vector<1x4x16xbf16> to vector<4x16xbf16>
    %cst_40 = arith.constant dense<0.000000e+00> : vector<64x16xf32>
    %38 = tpu.matmul %35, %37, %cst_40 {dimension_numbers = #tpu.dot_dimension_numbers<[1], [0], [0], [1], [0, 0, 1, 1], [], []>} : vector<64x4xbf16>, vector<4x16xbf16>, vector<64x16xf32> -> vector<64x16xf32>
    %39 = arith.addf %32, %38 : vector<64x16xf32>
    %c1_41 = arith.constant 1 : index
    %c1_42 = arith.constant 1 : index
    %c0_43 = arith.constant 0 : index
    %40 = vector.load %arg6[%c1_41, %c1_42, %c0_43] : memref<10x10x4xf32, #tpu.memory_space<vmem>>, vector<8x8x4xf32>
    %41 = vector.shape_cast %40 : vector<8x8x4xf32> to vector<64x4xf32>
    %42 = arith.truncf %41 : vector<64x4xf32> to vector<64x4xbf16>
    %c4 = arith.constant 4 : index
    %c0_44 = arith.constant 0 : index
    %c0_45 = arith.constant 0 : index
    %43 = vector.load %arg2[%c4, %c0_44, %c0_45] : memref<9x4x16xbf16, #tpu.memory_space<vmem>>, vector<1x4x16xbf16>
    %44 = vector.shape_cast %43 : vector<1x4x16xbf16> to vector<4x16xbf16>
    %cst_46 = arith.constant dense<0.000000e+00> : vector<64x16xf32>
    %45 = tpu.matmul %42, %44, %cst_46 {dimension_numbers = #tpu.dot_dimension_numbers<[1], [0], [0], [1], [0, 0, 1, 1], [], []>} : vector<64x4xbf16>, vector<4x16xbf16>, vector<64x16xf32> -> vector<64x16xf32>
    %46 = arith.addf %39, %45 : vector<64x16xf32>
    %c1_47 = arith.constant 1 : index
    %c2_48 = arith.constant 2 : index
    %c0_49 = arith.constant 0 : index
    %47 = vector.load %arg6[%c1_47, %c2_48, %c0_49] : memref<10x10x4xf32, #tpu.memory_space<vmem>>, vector<8x8x4xf32>
    %48 = vector.shape_cast %47 : vector<8x8x4xf32> to vector<64x4xf32>
    %49 = arith.truncf %48 : vector<64x4xf32> to vector<64x4xbf16>
    %c5 = arith.constant 5 : index
    %c0_50 = arith.constant 0 : index
    %c0_51 = arith.constant 0 : index
    %50 = vector.load %arg2[%c5, %c0_50, %c0_51] : memref<9x4x16xbf16, #tpu.memory_space<vmem>>, vector<1x4x16xbf16>
    %51 = vector.shape_cast %50 : vector<1x4x16xbf16> to vector<4x16xbf16>
    %cst_52 = arith.constant dense<0.000000e+00> : vector<64x16xf32>
    %52 = tpu.matmul %49, %51, %cst_52 {dimension_numbers = #tpu.dot_dimension_numbers<[1], [0], [0], [1], [0, 0, 1, 1], [], []>} : vector<64x4xbf16>, vector<4x16xbf16>, vector<64x16xf32> -> vector<64x16xf32>
    %53 = arith.addf %46, %52 : vector<64x16xf32>
    %c2_53 = arith.constant 2 : index
    %c0_54 = arith.constant 0 : index
    %c0_55 = arith.constant 0 : index
    %54 = vector.load %arg6[%c2_53, %c0_54, %c0_55] : memref<10x10x4xf32, #tpu.memory_space<vmem>>, vector<8x8x4xf32>
    %55 = vector.shape_cast %54 : vector<8x8x4xf32> to vector<64x4xf32>
    %56 = arith.truncf %55 : vector<64x4xf32> to vector<64x4xbf16>
    %c6 = arith.constant 6 : index
    %c0_56 = arith.constant 0 : index
    %c0_57 = arith.constant 0 : index
    %57 = vector.load %arg2[%c6, %c0_56, %c0_57] : memref<9x4x16xbf16, #tpu.memory_space<vmem>>, vector<1x4x16xbf16>
    %58 = vector.shape_cast %57 : vector<1x4x16xbf16> to vector<4x16xbf16>
    %cst_58 = arith.constant dense<0.000000e+00> : vector<64x16xf32>
    %59 = tpu.matmul %56, %58, %cst_58 {dimension_numbers = #tpu.dot_dimension_numbers<[1], [0], [0], [1], [0, 0, 1, 1], [], []>} : vector<64x4xbf16>, vector<4x16xbf16>, vector<64x16xf32> -> vector<64x16xf32>
    %60 = arith.addf %53, %59 : vector<64x16xf32>
    %c2_59 = arith.constant 2 : index
    %c1_60 = arith.constant 1 : index
    %c0_61 = arith.constant 0 : index
    %61 = vector.load %arg6[%c2_59, %c1_60, %c0_61] : memref<10x10x4xf32, #tpu.memory_space<vmem>>, vector<8x8x4xf32>
    %62 = vector.shape_cast %61 : vector<8x8x4xf32> to vector<64x4xf32>
    %63 = arith.truncf %62 : vector<64x4xf32> to vector<64x4xbf16>
    %c7 = arith.constant 7 : index
    %c0_62 = arith.constant 0 : index
    %c0_63 = arith.constant 0 : index
    %64 = vector.load %arg2[%c7, %c0_62, %c0_63] : memref<9x4x16xbf16, #tpu.memory_space<vmem>>, vector<1x4x16xbf16>
    %65 = vector.shape_cast %64 : vector<1x4x16xbf16> to vector<4x16xbf16>
    %cst_64 = arith.constant dense<0.000000e+00> : vector<64x16xf32>
    %66 = tpu.matmul %63, %65, %cst_64 {dimension_numbers = #tpu.dot_dimension_numbers<[1], [0], [0], [1], [0, 0, 1, 1], [], []>} : vector<64x4xbf16>, vector<4x16xbf16>, vector<64x16xf32> -> vector<64x16xf32>
    %67 = arith.addf %60, %66 : vector<64x16xf32>
    %c2_65 = arith.constant 2 : index
    %c2_66 = arith.constant 2 : index
    %c0_67 = arith.constant 0 : index
    %68 = vector.load %arg6[%c2_65, %c2_66, %c0_67] : memref<10x10x4xf32, #tpu.memory_space<vmem>>, vector<8x8x4xf32>
    %69 = vector.shape_cast %68 : vector<8x8x4xf32> to vector<64x4xf32>
    %70 = arith.truncf %69 : vector<64x4xf32> to vector<64x4xbf16>
    %c8 = arith.constant 8 : index
    %c0_68 = arith.constant 0 : index
    %c0_69 = arith.constant 0 : index
    %71 = vector.load %arg2[%c8, %c0_68, %c0_69] : memref<9x4x16xbf16, #tpu.memory_space<vmem>>, vector<1x4x16xbf16>
    %72 = vector.shape_cast %71 : vector<1x4x16xbf16> to vector<4x16xbf16>
    %cst_70 = arith.constant dense<0.000000e+00> : vector<64x16xf32>
    %73 = tpu.matmul %70, %72, %cst_70 {dimension_numbers = #tpu.dot_dimension_numbers<[1], [0], [0], [1], [0, 0, 1, 1], [], []>} : vector<64x4xbf16>, vector<4x16xbf16>, vector<64x16xf32> -> vector<64x16xf32>
    %74 = arith.addf %67, %73 : vector<64x16xf32>
    %c0_71 = arith.constant 0 : index
    %c0_72 = arith.constant 0 : index
    %75 = vector.load %arg3[%c0_71, %c0_72] : memref<1x16xf32, #tpu.memory_space<vmem>>, vector<1x16xf32>
    %76 = vector.broadcast %75 : vector<1x16xf32> to vector<64x16xf32>
    %77 = arith.mulf %74, %76 : vector<64x16xf32>
    %c0_73 = arith.constant 0 : index
    %c0_74 = arith.constant 0 : index
    %78 = vector.load %arg4[%c0_73, %c0_74] : memref<1x16xf32, #tpu.memory_space<vmem>>, vector<1x16xf32>
    %79 = vector.broadcast %78 : vector<1x16xf32> to vector<64x16xf32>
    %80 = arith.addf %77, %79 : vector<64x16xf32>
    %cst_75 = arith.constant 0.000000e+00 : f32
    %81 = vector.broadcast %cst_75 : f32 to vector<64x16xf32>
    %82 = arith.maximumf %80, %81 : vector<64x16xf32>
    %83 = arith.truncf %82 : vector<64x16xf32> to vector<64x16xbf16>
    %c0_76 = arith.constant 0 : index
    %c0_77 = arith.constant 0 : index
    %c0_78 = arith.constant 0 : index
    %84 = vector.load %arg5[%c0_76, %c0_77, %c0_78] : memref<1x64x16xbf16, #tpu.memory_space<vmem>>, vector<1x64x16xbf16>
    %85 = vector.shape_cast %84 : vector<1x64x16xbf16> to vector<64x16xbf16>
    %86 = vector.shape_cast %83 : vector<64x16xbf16> to vector<1x64x16xbf16>
    tpu.vector_store %arg5[%c0_76, %c0_77, %c0_78], %86 {strides = array<i32>} : memref<1x64x16xbf16, #tpu.memory_space<vmem>>, vector<1x64x16xbf16>,
    return
  }
  func.func @transform_0(%arg0: i32) -> (i32, i32, i32, i32, i32) {
    %c0_i32 = arith.constant 0 : i32
    %c0_i32_0 = arith.constant 0 : i32
    %c0_i32_1 = arith.constant 0 : i32
    %c0_i32_2 = arith.constant 0 : i32
    %c0_i32_3 = arith.constant 0 : i32
    return %arg0, %c0_i32, %c0_i32_0, %c0_i32_1, %c0_i32_2 : i32, i32, i32, i32, i32
  }
  func.func @transform_1(%arg0: i32) -> (i32, i32, i32) {
    %c0_i32 = arith.constant 0 : i32
    %c0_i32_0 = arith.constant 0 : i32
    %c0_i32_1 = arith.constant 0 : i32
    %c0_i32_2 = arith.constant 0 : i32
    return %c0_i32, %c0_i32_0, %c0_i32_1 : i32, i32, i32
  }
  func.func @transform_2(%arg0: i32) -> (i32, i32) {
    %c0_i32 = arith.constant 0 : i32
    %c0_i32_0 = arith.constant 0 : i32
    %c0_i32_1 = arith.constant 0 : i32
    return %c0_i32, %c0_i32_0 : i32, i32
  }
  func.func @transform_3(%arg0: i32) -> (i32, i32) {
    %c0_i32 = arith.constant 0 : i32
    %c0_i32_0 = arith.constant 0 : i32
    %c0_i32_1 = arith.constant 0 : i32
    return %c0_i32, %c0_i32_0 : i32, i32
  }
  func.func @transform_4(%arg0: i32) -> (i32, i32, i32) {
    %c0_i32 = arith.constant 0 : i32
    %c0_i32_0 = arith.constant 0 : i32
    %c0_i32_1 = arith.constant 0 : i32
    return %arg0, %c0_i32, %c0_i32_0 : i32, i32, i32
  }
}

</mosaic_0001>

<bundles_post_ra>
// kernel: _lambda_.2
= control target key start
LH: loop header
LB: loop body
LE: loop exit
PB: predicated region body
PF: predicated region fallthrough
CT: control target
= control target key end

     0   :  { %s1671_s15 = smov 0   ;;  %s1899_s0 = inlined_call_operand.vmem [shape: f32[2,8,2,8,8], index: 0, kind: input, shape index: {}]   ;;  %s1900_s1 = inlined_call_operand.vmem [shape: bf16[9,4,16], index: 1, kind: input, shape index: {}]   ;;  %s1901_s2 = inlined_call_operand.vmem [shape: f32[1,16], index: 2, kind: input, shape index: {}]   ;;  %s1902_s3 = inlined_call_operand.vmem [shape: f32[1,16], index: 3, kind: input, shape index: {}]   ;;  %s1903_s4 = inlined_call_operand.vmem [shape: bf16[2,64,16], index: 4, kind: output, shape index: {}]  }
   0x1 LB: > { %s1332_s16 = sadd.s32 4294967295, %s1642_s15   ;;  %p1336_p0 = scmp.ge.s32.totalorder %s1642_s15, 1  ;;  %s1642_s15 = sphi %s1671_s15, %s14_s15  }
   0x2   : > { %p162_p1 = scmp.lt.s32.totalorder %s1642_s15, 3 }
   0x4   : > { %p163_p2 = pnand %p1336_p0, %p162_p1 }
   0x5   : > { %p1679_p3 = scmp.lt.s32.totalorder (!%p163_p2), %s1332_s16, 1  ;;  %vm264_vm0 = vcmask (!%p163_p2), 31744   ;;  %vm266_vm1 = vcmask (!%p163_p2), 25600   ;;  %v1644_v0 = vmov (!%p163_p2), 0.0   ;;  %s1645_s22 = smov (!%p163_p2), 124   ;;  %vm334_vm2 = vcmask (!%p163_p2), 1041408  }
   0x6   : > { %166 = sbr.rel (%p163_p2) target bundleno = 446 (0x1be), region = 36  ;;  %272 = vst.msk [vmem:[#allocation2 + $0x30] sm:$0xff] (!%p163_p2), %vm264_vm0, %v1644_v0  ;;  %265 = vst.msk [vmem:[#allocation2] sm:$0xff] (!%p163_p2), %vm264_vm0, %v1644_v0  ;;  %v1349_v17 = vld [vmem:[%s1900_s1 + $0x2] sm:$0x3] (!%p163_p2)  ;;  %vm1268_vm3 = vcmask (!%p163_p2), 125952  }
   0x7   : > { %273 = vst.msk [vmem:[#allocation2 + $0x38] sm:$0x3] (!%p163_p2), %vm266_vm1, %v1644_v0  ;;  %267 = vst.msk [vmem:[#allocation2 + $0x8] sm:$0x3] (!%p163_p2), %vm266_vm1, %v1644_v0  ;;  %v1733_v18 = vld [vmem:[%s1900_s1 + $0x8] sm:$0x3] (!%p163_p2)  ;;  %1616 = vmatprep.subr.msk.bf16.mxu1 (!%p163_p2), %vm334_vm2, %v1349_v17 }
   0x8   : > { %268 = vst.msk [vmem:[#allocation2 + $0x10] sm:$0xff] (!%p163_p2), %vm264_vm0, %v1644_v0  ;;  %270 = vst.msk [vmem:[#allocation2 + $0x20] sm:$0xff] (!%p163_p2), %vm264_vm0, %v1644_v0  ;;  %1620 = vmatprep.subr.msk.bf16.mxu0 (!%p163_p2), %vm334_vm2, %v1733_v18  ;;  %v336_v19 = vsel (!%p163_p2), %vm334_vm2, %v1349_v17, 0  ;;  %v1741_v20 = vsel (!%p163_p2), %vm334_vm2, %v1733_v18, 0  ;;  %v307_v22 = vld [vmem:[%s1900_s1] sm:$0x3] (!%p163_p2) }
   0x9   : > { %269 = vst.msk [vmem:[#allocation2 + $0x18] sm:$0x3] (!%p163_p2), %vm266_vm1, %v1644_v0  ;;  %271 = vst.msk [vmem:[#allocation2 + $0x28] sm:$0x3] (!%p163_p2), %vm266_vm1, %v1644_v0  ;;  %1461 = vmatpush3.bf16.msra.mxu1 (!%p163_p2), %v336_v19  ;;  %v1373_v23 = vld [vmem:[%s1900_s1 + $0xa] sm:$0x3] (!%p163_p2)  ;;  %1501 = vmatpush3.bf16.msra.mxu0 (!%p163_p2), %v1741_v20 }
   0xa   : > { %274 = vst.msk [vmem:[#allocation2 + $0x40] sm:$0xff] (!%p163_p2), %vm264_vm0, %v1644_v0  ;;  %276 = vst.msk [vmem:[#allocation2 + $0x50] sm:$0xff] (!%p163_p2), %vm264_vm0, %v1644_v0  ;;  %1617 = vmatprep.subr.msk.bf16.mxu1 (!%p163_p2), %vm334_vm2, %v307_v22  ;;  %1622 = vmatprep.subr.msk.bf16.mxu0 (!%p163_p2), %vm334_vm2, %v1373_v23  ;;  %v416_v57 = vsel (!%p163_p2), %vm334_vm2, %v307_v22, 0  ;;  %v816_v58 = vsel (!%p163_p2), %vm334_vm2, %v1373_v23, 0  ;;  %v1378_v61 = vld [vmem:[%s1900_s1 + $0xc] sm:$0x3] (!%p163_p2) }
   0xb   : > { %275 = vst.msk [vmem:[#allocation2 + $0x48] sm:$0x3] (!%p163_p2), %vm266_vm1, %v1644_v0  ;;  %277 = vst.msk [vmem:[#allocation2 + $0x58] sm:$0x3] (!%p163_p2), %vm266_vm1, %v1644_v0  ;;  %v1358_v62 = vld [vmem:[%s1900_s1 + $0x4] sm:$0x3] (!%p163_p2) }
   0xc   : > { %278 = vst.msk [vmem:[#allocation2 + $0x60] sm:$0xff] (!%p163_p2), %vm264_vm0, %v1644_v0  ;;  %280 = vst.msk [vmem:[#allocation2 + $0x70] sm:$0xff] (!%p163_p2), %vm264_vm0, %v1644_v0  ;;  %v510_v22 = vsel (!%p163_p2), %vm334_vm2, %v1358_v62, 0 }
   0xd   : > { %279 = vst.msk [vmem:[#allocation2 + $0x68] sm:$0x3] %vm266_vm1, %v1644_v0  ;;  %281 = vst.msk [vmem:[#allocation2 + $0x78] sm:$0x3] %vm266_vm1, %v1644_v0  ;;  %s1906_s16 = smov (!%p1679_p3, %s1332_s16), 1 }
   0xe   : > { %282 = vst.msk [vmem:[#allocation2 + $0x80] sm:$0xff] %vm264_vm0, %v1644_v0  ;;  %284 = vst.msk [vmem:[#allocation2 + $0x90] sm:$0xff] %vm264_vm0, %v1644_v0  ;;  %s1405_s18 = sshll.u32 %s1906_s16, 7  ;;  %v308_v42 = vld [vmem:[#allocation2 + $0x1] sm:$0xff] }
   0xf   : > { %283 = vst.msk [vmem:[#allocation2 + $0x88] sm:$0x3] %vm266_vm1, %v1644_v0  ;;  %285 = vst.msk [vmem:[#allocation2 + $0x98] sm:$0x3] %vm266_vm1, %v1644_v0  ;;  %s1711_s21 = scalar_lea.vmem %s1899_s0, %s1405_s18 }
  0x10   : > { %v201_v1 = vld [vmem:[%s1711_s21 + $0x20] sm:$0xff]  ;;  %v1343_v2 = vld [vmem:[%s1711_s21 + $0x28] sm:$0xff]  ;;  %v202_v6 = vld [vmem:[%s1711_s21 + $0x30] sm:$0xff] }
  0x11   : > { %v199_v3 = vld [vmem:[%s1711_s21] sm:$0xff]  ;;  %v218_v4 = vmax.f32 %v201_v1, %v1343_v2  ;;  %v1341_v5 = vld [vmem:[%s1711_s21 + $0x8] sm:$0xff]  ;;  %v1344_v7 = vld [vmem:[%s1711_s21 + $0x38] sm:$0xff] }
  0x12   : > { %v216_v8 = vmax.f32 %v199_v3, %v1341_v5  ;;  %v200_v9 = vld [vmem:[%s1711_s21 + $0x10] sm:$0xff]  ;;  %v1342_v10 = vld [vmem:[%s1711_s21 + $0x18] sm:$0xff]  ;;  %v219_v11 = vmax.f32 %v202_v6, %v1344_v7  ;;  %v203_v13 = vld [vmem:[%s1711_s21 + $0x40] sm:$0xff] }
  0x13   : > { %236 = vrot.lane.b32.xlu1 %v218_v4, %s1645_s22  ;;  %v217_v12 = vmax.f32 %v200_v9, %v1342_v10  ;;  %v204_v14 = vld [vmem:[%s1711_s21 + $0x50] sm:$0xff]  ;;  %v1346_v15 = vld [vmem:[%s1711_s21 + $0x58] sm:$0xff]  ;;  %v1345_v16 = vld [vmem:[%s1711_s21 + $0x48] sm:$0xff] }
  0x14   : > { %232 = vrot.lane.b32.xlu0 %v216_v8, %s1645_s22  ;;  %v221_v21 = vmax.f32 %v204_v14, %v1346_v15  ;;  %v220_v24 = vmax.f32 %v203_v13, %v1345_v16  ;;  %v206_v25 = vld [vmem:[%s1711_s21 + $0x70] sm:$0xff]  ;;  %v1348_v26 = vld [vmem:[%s1711_s21 + $0x78] sm:$0xff]  ;;  %v205_v27 = vld [vmem:[%s1711_s21 + $0x60] sm:$0xff] }
  0x15   : > { %v1347_v28 = vld [vmem:[%s1711_s21 + $0x68] sm:$0xff]  ;;  %v223_v29 = vmax.f32 %v206_v25, %v1348_v26  ;;  %v295_v1 = vld [vmem:[#allocation2] sm:$0xff]  ;;  %s1406_s21 = sshll.u32 %s1906_s16, 5 }
  0x16   : > { %v222_v30 = vmax.f32 %v205_v27, %v1347_v28  ;;  %v1383_v16 = vld [vmem:[%s1900_s1 + $0xe] sm:$0x3]  ;;  %s1878_s24 = scalar_lea.vmem %s1903_s4, %s1406_s21 }
  0x17   : > { %238 = vrot.lane.b32.xlu1 %v219_v11, %s1645_s22 }
  0x18   : > { %234 = vrot.lane.b32.xlu0 %v217_v12, %s1645_s22 }
  0x1b   : > { %242 = vrot.lane.b32.xlu1 %v221_v21, %s1645_s22 }
  0x1c   : > { %240 = vrot.lane.b32.xlu0 %v220_v24, %s1645_s22 }
  0x1f   : > { %246 = vrot.lane.b32.xlu1 %v223_v29, %s1645_s22 }
  0x20   : > { %244 = vrot.lane.b32.xlu0 %v222_v30, %s1645_s22 }
  0x85   : > { %v237_v31 = vpop.permute.xlu1 %236 }
  0x86   : > { %v258_v32 = vmax.f32 %v218_v4, %v237_v31  ;;  %v233_v33 = vpop.permute.xlu0 %232 }
  0x87   : > { %v256_v34 = vmax.f32 %v216_v8, %v233_v33  ;;  %v1021_v33 = vsel %vm334_vm2, %v1383_v16, 0 }
  0x88   : > { %289 = vst.msk [vmem:[#allocation2 + $0x31] sm:$0xff] %vm264_vm0, %v258_v32 }
  0x89   : > { %287 = vst.msk [vmem:[#allocation2 + $0x11] sm:$0xff] %vm264_vm0, %v256_v34  ;;  %v239_v35 = vpop.permute.xlu1 %238  ;;  %v1388_v34 = vld [vmem:[%s1900_s1 + $0x10] sm:$0x3] }
  0x8a   : > { %v259_v36 = vmax.f32 %v219_v11, %v239_v35  ;;  %v235_v37 = vpop.permute.xlu0 %234 }
  0x8b   : > { %v257_v38 = vmax.f32 %v217_v12, %v235_v37  ;;  %v919_v12 = vsel %vm334_vm2, %v1378_v61, 0 }
  0x8c   : > { %290 = vst.msk [vmem:[#allocation2 + $0x41] sm:$0xff] %vm264_vm0, %v259_v36 }
  0x8d   : > { %288 = vst.msk [vmem:[#allocation2 + $0x21] sm:$0xff] %vm264_vm0, %v257_v38  ;;  %v243_v39 = vpop.permute.xlu1 %242  ;;  %v899_v38 = vld [vmem:[#allocation2 + $0x90] sm:$0xff] }
  0x8e   : > { %v241_v40 = vpop.permute.xlu0 %240  ;;  %v261_v41 = vmax.f32 %v221_v21, %v243_v39 }
  0x8f   : > { %v260_v43 = vmax.f32 %v220_v24, %v241_v40  ;;  %v311_v50 = vld [vmem:[#allocation2 + $0x31] sm:$0xff]  ;;  %v1363_v24 = vld [vmem:[%s1900_s1 + $0x6] sm:$0x3] }
  0x90   : > { %292 = vst.msk [vmem:[#allocation2 + $0x61] sm:$0xff] %vm264_vm0, %v261_v41  ;;  %v309_v44 = vld [vmem:[#allocation2 + $0x11] sm:$0xff]  ;;  %v612_v36 = vsel %vm334_vm2, %v1363_v24, 0 }
  0x91   : > { %291 = vst.msk [vmem:[#allocation2 + $0x51] sm:$0xff] %vm264_vm0, %v260_v43  ;;  %v247_v45 = vpop.permute.xlu1 %246  ;;  %v316_v46 = vpack.c.bf16 %v309_v44, %v308_v42  ;;  %v789_v59 = vld [vmem:[#allocation2 + $0x12] sm:$0xff]  ;;  %v1123_v43 = vsel %vm334_vm2, %v1388_v34, 0 }
  0x92   : > { %v245_v47 = vpop.permute.xlu0 %244  ;;  %v263_v48 = vmax.f32 %v223_v29, %v247_v45  ;;  %v1798_v2 = vld [vmem:[#allocation2 + $0x10] sm:$0xff]  ;;  %v483_v29 = vld [vmem:[#allocation2 + $0x2] sm:$0xff] }
  0x93   : > { %v262_v49 = vmax.f32 %v222_v30, %v245_v47  ;;  %1462 = vmatprep.mubr.msk.bf16.mxu1 %vm264_vm0, %v316_v46  ;;  %v690_v51 = vld [vmem:[#allocation2 + $0x41] sm:$0xff]  ;;  %v303_v6 = vpack.c.bf16 %v1798_v2, %v295_v1  ;;  %v791_v10 = vld [vmem:[#allocation2 + $0x32] sm:$0xff]  ;;  %v491_v32 = vpack.c.bf16 %v789_v59, %v483_v29 }
  0x94   : > { %294 = vst.msk [vmem:[#allocation2 + $0x81] sm:$0xff] %vm264_vm0, %v263_v48  ;;  %v310_v52 = vld [vmem:[#allocation2 + $0x21] sm:$0xff]  ;;  %v696_v53 = vpack.c.bf16 %v690_v51, %v311_v50  ;;  %v298_v17 = vld [vmem:[#allocation2 + $0x30] sm:$0xff] }
  0x95   : > { %v1770_v54 = vld [vmem:[#allocation2 + $0x22] sm:$0xff]  ;;  %293 = vst.msk [vmem:[#allocation2 + $0x71] sm:$0xff] %vm264_vm0, %v262_v49  ;;  %v1773_v55 = vpack.c.bf16 %v311_v50, %v310_v52  ;;  %v695_v56 = vpack.c.bf16 %v310_v52, %v309_v44  ;;  %v1001_v45 = vld [vmem:[#allocation2 + $0x91] sm:$0xff] }
  0x96   : > { %v797_v60 = vpack.c.bf16 %v1770_v54, %v789_v59  ;;  %v792_v7 = vld [vmem:[#allocation2 + $0x42] sm:$0xff]  ;;  %v492_v35 = vpack.c.bf16 %v791_v10, %v1770_v54  ;;  %v1103_v50 = vld [vmem:[#allocation2 + $0x92] sm:$0xff] }
  0x97   : > { %1463 = vmatmul.mubr.msk.bf16.vlgmr.msra.gmra.mrb[0].mxu1 %vm264_vm0, %v1773_v55  ;;  %1502 = vmatprep.mubr.msk.bf16.mxu0 %vm264_vm0, %v695_v56  ;;  %v1800_v3 = vld [vmem:[#allocation2 + $0x61] sm:$0xff]  ;;  %v798_v11 = vpack.c.bf16 %v792_v7, %v791_v10 }
  0x98   : > { %1471 = vmatpush3.bf16.msra.mxu1 %v416_v57  ;;  %1503 = vmatmul.mubr.msk.bf16.vlgmr.msra.gmra.mrb[0].mxu0 %vm264_vm0, %v696_v53  ;;  %v1788_v63 = vld [vmem:[#allocation2 + $0x51] sm:$0xff]  ;;  %v794_v9 = vld [vmem:[#allocation2 + $0x62] sm:$0xff]  ;;  %v1393_v57 = vld [vmem:[%s1901_s2] ss:$0 sm:$0xff] }
  0x99   : > { %1511 = vmatpush3.bf16.msra.mxu0 %v816_v58  ;;  %1512 = vmatprep.mubr.msk.bf16.mxu0 %vm264_vm0, %v797_v60  ;;  %v1792_v0 = vpack.c.bf16 %v1788_v63, %v690_v51  ;;  %v793_v8 = vld [vmem:[#allocation2 + $0x52] sm:$0xff]  ;;  %v297_v13 = vld [vmem:[#allocation2 + $0x20] sm:$0xff]  ;;  %v697_v49 = vpack.c.bf16 %v1800_v3, %v1788_v63 }
  0x9a   : > { %1623 = vmatprep.subr.msk.bf16.mxu0 %vm334_vm2, %v1378_v61  ;;  %1618 = vmatprep.subr.msk.bf16.mxu1 %vm334_vm2, %v1358_v62  ;;  %v799_v14 = vpack.c.bf16 %v794_v9, %v793_v8  ;;  %v300_v15 = vld [vmem:[#allocation2 + $0x50] sm:$0xff]  ;;  %v304_v19 = vpack.c.bf16 %v298_v17, %v297_v13  ;;  %v299_v21 = vld [vmem:[#allocation2 + $0x40] sm:$0xff]  ;;  %v493_v37 = vpack.c.bf16 %v793_v8, %v792_v7 }
  0x9b   : > { %1466 = vmatprep.mubr.msk.bf16.mxu1 %vm264_vm0, %v1792_v0  ;;  %v305_v23 = vpack.c.bf16 %v300_v15, %v299_v21  ;;  %v796_v26 = vld [vmem:[#allocation2 + $0x82] sm:$0xff]  ;;  %v593_v42 = vpack.c.bf16 %v297_v13, %v1798_v2  ;;  %v1394_v60 = vld [vmem:[%s1902_s3] ss:$0 sm:$0xff] }
  0x9c   : > { %v1802_v4 = vld [vmem:[#allocation2 + $0x71] sm:$0xff]  ;;  %v301_v30 = vld [vmem:[#allocation2 + $0x60] sm:$0xff]  ;;  %v1107_v51 = vpack.c.bf16 %v1103_v50, %v796_v26 }
  0x9d   : > { %v1806_v5 = vpack.c.bf16 %v1802_v4, %v1800_v3  ;;  %v795_v25 = vld [vmem:[#allocation2 + $0x72] sm:$0xff]  ;;  %v898_v39 = vld [vmem:[#allocation2 + $0x80] sm:$0xff]  ;;  %v595_v44 = vpack.c.bf16 %v301_v30, %v300_v15 }
  0x9e   : > { %v800_v27 = vpack.c.bf16 %v796_v26, %v795_v25  ;;  %v302_v28 = vld [vmem:[#allocation2 + $0x70] sm:$0xff]  ;;  %v903_v40 = vpack.c.bf16 %v899_v38, %v898_v39  ;;  %v494_v41 = vpack.c.bf16 %v795_v25, %v794_v9  ;;  %v1000_v46 = vld [vmem:[#allocation2 + $0x81] sm:$0xff] }
  0x9f   : > { %1467 = vmatmul.mubr.msk.bf16.gmra.mrb[4].mxu1 %vm264_vm0, %v1806_v5  ;;  %v306_v31 = vpack.c.bf16 %v302_v28, %v301_v30  ;;  %v1005_v47 = vpack.c.bf16 %v1001_v45, %v1000_v46  ;;  %v596_v48 = vpack.c.bf16 %v898_v39, %v302_v28 }
  0xa0   : > { %1472 = vmatprep.mubr.msk.bf16.mxu1 %vm264_vm0, %v303_v6 }
  0xa4   : > { %1513 = vmatmul.mubr.msk.bf16.vlgmr.msra.gmra.mrb[0].mxu0 %vm264_vm0, %v798_v11 }
  0xa5   : > { %1521 = vmatpush3.bf16.msra.mxu0 %v919_v12  ;;  %1516 = vmatprep.mubr.msk.bf16.mxu0 %vm264_vm0, %v799_v14 }
  0xa6   : > { %1624 = vmatprep.subr.msk.bf16.mxu0 %vm334_vm2, %v1383_v16 }
  0xa7   : > { %1473 = vmatmul.mubr.msk.bf16.vlgmr.msra.gmra.mrb[0].mxu1 %vm264_vm0, %v304_v19 }
  0xa8   : > { %1476 = vmatprep.mubr.msk.bf16.mxu1 %vm264_vm0, %v305_v23  ;;  %1481 = vmatpush3.bf16.msra.mxu1 %v510_v22 }
  0xa9   : > { %1619 = vmatprep.subr.msk.bf16.mxu1 %vm334_vm2, %v1363_v24 }
  0xac   : > { %1517 = vmatmul.mubr.msk.bf16.gmra.mrb[4].mxu0 %vm264_vm0, %v800_v27 }
  0xad   : > { %1522 = vmatprep.mubr.msk.bf16.mxu0 %vm264_vm0, %v304_v19 }
  0xaf   : > { %1477 = vmatmul.mubr.msk.bf16.gmra.mrb[4].mxu1 %vm264_vm0, %v306_v31 }
  0xb0   : > { %1482 = vmatprep.mubr.msk.bf16.mxu1 %vm264_vm0, %v491_v32 }
  0xb4   : > { %1523 = vmatmul.mubr.msk.bf16.vlgmr.msra.gmra.mrb[0].mxu0 %vm264_vm0, %v305_v23 }
  0xb5   : > { %1531 = vmatpush3.bf16.msra.mxu0 %v1021_v33  ;;  %1526 = vmatprep.mubr.msk.bf16.mxu0 %vm264_vm0, %v306_v31 }
  0xb6   : > { %1625 = vmatprep.subr.msk.bf16.mxu0 %vm334_vm2, %v1388_v34 }
  0xb7   : > { %1483 = vmatmul.mubr.msk.bf16.vlgmr.msra.gmra.mrb[0].mxu1 %vm264_vm0, %v492_v35 }
  0xb8   : > { %1486 = vmatprep.mubr.msk.bf16.mxu1 %vm264_vm0, %v493_v37  ;;  %1491 = vmatpush3.bf16.msra.mxu1 %v612_v36 }
  0xb9   : > { %1621 = vmatprep.subr.msk.bf16.mxu1 %vm334_vm2, %v1733_v18  ;;  %v594_v18 = vpack.c.bf16 %v299_v21, %v298_v17 }
  0xbc   : > { %1527 = vmatmul.mubr.msk.bf16.gmra.mrb[4].mxu0 %vm264_vm0, %v903_v40 }
  0xbd   : > { %1532 = vmatprep.mubr.msk.bf16.mxu0 %vm264_vm0, %v1773_v55 }
  0xbf   : > { %1487 = vmatmul.mubr.msk.bf16.gmra.mrb[4].mxu1 %vm264_vm0, %v494_v41 }
  0xc0   : > { %1492 = vmatprep.mubr.msk.bf16.mxu1 %vm264_vm0, %v593_v42 }
  0xc4   : > { %1533 = vmatmul.mubr.msk.bf16.vlgmr.msra.gmra.mrb[0].mxu0 %vm264_vm0, %v1792_v0 }
  0xc5   : > { %1541 = vmatpush3.bf16.msra.mxu0 %v1123_v43  ;;  %1536 = vmatprep.mubr.msk.bf16.mxu0 %vm264_vm0, %v1806_v5 }
  0xc7   : > { %1493 = vmatmul.mubr.msk.bf16.vlgmr.msra.gmra.mrb[0].mxu1 %vm264_vm0, %v594_v18 }
  0xc8   : > { %1496 = vmatprep.mubr.msk.bf16.mxu1 %vm264_vm0, %v595_v44  ;;  %1551 = vmatpush3.bf16.msra.mxu1 %v1741_v20  ;;  %v698_v20 = vpack.c.bf16 %v1000_v46, %v1802_v4 }
  0xcc   : > { %1537 = vmatmul.mubr.msk.bf16.gmra.mrb[4].mxu0 %vm264_vm0, %v1005_v47 }
  0xcd   : > { %1542 = vmatprep.mubr.msk.bf16.mxu0 %vm264_vm0, %v492_v35 }
  0xcf   : > { %1497 = vmatmul.mubr.msk.bf16.gmra.mrb[4].mxu1 %vm264_vm0, %v596_v48 }
  0xd0   : > { %1506 = vmatprep.mubr.msk.bf16.mxu1 %vm264_vm0, %v697_v49 }
  0xd4   : > { %1543 = vmatmul.mubr.msk.bf16.vlgmr.msra.gmra.mrb[0].mxu0 %vm264_vm0, %v493_v37 }
  0xd5   : > { %1546 = vmatprep.mubr.msk.bf16.mxu0 %vm264_vm0, %v494_v41 }
  0xdb   : > { %1507 = vmatmul.mubr.msk.bf16.vlgmr.msra.gmra.mrb[4].mxu1 %vm264_vm0, %v698_v20 }
  0xdc   : > { %1547 = vmatmul.mubr.msk.bf16.gmra.mrb[4].mxu0 %vm264_vm0, %v1107_v51 }
 0x19a   : > { %v1494_v52 = vpop.f32.mrb[0].mxu1 }
 0x19b   : > { %v648_v53 = vpop.f32.mrb[1].mxu1 }
 0x19c   : > { %v1495_v54 = vpop.f32.mrb[2].mxu1 }
 0x19d   : > { %v651_v55 = vpop.f32.mrb[3].mxu1 }
 0x1a7   : > { %v1544_v56 = vpop.f32.mrb[0].mxu0 }
 0x1a8   : > { %v1552_v58 = vadd.f32 %v1544_v56, %v1494_v52  ;;  %v1159_v59 = vpop.f32.mrb[1].mxu0 }
 0x1a9   : > { %v1553_v61 = vadd.f32 %v1159_v59, %v648_v53  ;;  %v1545_v62 = vpop.f32.mrb[2].mxu0 }
 0x1aa   : > { %v1207_v63 = vmul.f32 %v1552_v58, %v1393_v57  ;;  %v1554_v0 = vadd.f32 %v1545_v62, %v1495_v54  ;;  %v1162_v1 = vpop.f32.mrb[3].mxu0 }
 0x1ab   : > { %v1205_v2 = vmul.f32 %v1553_v61, %v1393_v57  ;;  %v1555_v3 = vadd.f32 %v1162_v1, %v651_v55 }
 0x1ac   : > { %v1222_v4 = vadd.f32 %v1394_v60, %v1207_v63  ;;  %v1208_v5 = vmul.f32 %v1554_v0, %v1393_v57 }
 0x1ad   : > { %v1220_v6 = vadd.f32 %v1394_v60, %v1205_v2  ;;  %v1206_v7 = vmul.f32 %v1555_v3, %v1393_v57 }
 0x1ae   : > { %v1230_v8 = vmax.f32 %v1222_v4, 0.0  ;;  %v1223_v9 = vadd.f32 %v1394_v60, %v1208_v5  ;;  %v1508_v10 = vpop.f32.mrb[4].mxu1 }
 0x1af   : > { %v1228_v11 = vmax.f32 %v1220_v6, 0.0  ;;  %v1221_v12 = vadd.f32 %v1394_v60, %v1206_v7  ;;  %v766_v13 = vpop.f32.mrb[5].mxu1  ;;  %v1548_v14 = vpop.f32.mrb[4].mxu0 }
 0x1b0   : > { %v1409_v15 = vpack.c.bf16 %v1230_v8, %v1230_v8  ;;  %v1231_v16 = vmax.f32 %v1223_v9, 0.0  ;;  %v1556_v17 = vadd.f32 %v1548_v14, %v1508_v10  ;;  %v1509_v19 = vpop.f32.mrb[6].mxu1  ;;  %v1175_v21 = vpop.f32.mrb[5].mxu0 }
 0x1b1   : > { %v1407_v22 = vpack.c.bf16 %v1228_v11, %v1228_v11  ;;  %v1229_v23 = vmax.f32 %v1221_v12, 0.0  ;;  %v1557_v24 = vadd.f32 %v1175_v21, %v766_v13  ;;  %v769_v25 = vpop.f32.mrb[7].mxu1  ;;  %v1549_v26 = vpop.f32.mrb[6].mxu0 }
 0x1b2   : > { %1271 = vst.msk [vmem:[%s1878_s24 + $0x8] sm:$0xf] %vm1268_vm3, %v1409_v15  ;;  %v1410_v27 = vpack.c.bf16 %v1231_v16, %v1231_v16  ;;  %v1211_v28 = vmul.f32 %v1556_v17, %v1393_v57  ;;  %v1558_v29 = vadd.f32 %v1549_v26, %v1509_v19  ;;  %v1178_v30 = vpop.f32.mrb[7].mxu0 }
 0x1b3   : > { %1269 = vst.msk [vmem:[%s1878_s24] sm:$0xf] %vm1268_vm3, %v1407_v22  ;;  %v1408_v31 = vpack.c.bf16 %v1229_v23, %v1229_v23  ;;  %v1209_v32 = vmul.f32 %v1557_v24, %v1393_v57  ;;  %v1559_v33 = vadd.f32 %v1178_v30, %v769_v25 }
 0x1b4   : > { %1272 = vst.msk [vmem:[%s1878_s24 + $0xc] sm:$0xf] %vm1268_vm3, %v1410_v27  ;;  %v1226_v34 = vadd.f32 %v1394_v60, %v1211_v28  ;;  %v1212_v35 = vmul.f32 %v1558_v29, %v1393_v57 }
 0x1b5   : > { %1270 = vst.msk [vmem:[%s1878_s24 + $0x4] sm:$0xf] %vm1268_vm3, %v1408_v31  ;;  %v1224_v36 = vadd.f32 %v1394_v60, %v1209_v32  ;;  %v1210_v37 = vmul.f32 %v1559_v33, %v1393_v57 }
 0x1b6   : > { %v1234_v38 = vmax.f32 %v1226_v34, 0.0  ;;  %v1227_v39 = vadd.f32 %v1394_v60, %v1212_v35 }
 0x1b7   : > { %v1232_v40 = vmax.f32 %v1224_v36, 0.0  ;;  %v1225_v41 = vadd.f32 %v1394_v60, %v1210_v37 }
 0x1b8   : > { %v1413_v42 = vpack.c.bf16 %v1234_v38, %v1234_v38  ;;  %v1235_v43 = vmax.f32 %v1227_v39, 0.0 }
 0x1b9   : > { %v1411_v18 = vpack.c.bf16 %v1232_v40, %v1232_v40  ;;  %v1233_v44 = vmax.f32 %v1225_v41, 0.0 }
 0x1ba   : > { %1275 = vst.msk [vmem:[%s1878_s24 + $0x18] sm:$0xf] %vm1268_vm3, %v1413_v42  ;;  %v1414_v45 = vpack.c.bf16 %v1235_v43, %v1235_v43 }
 0x1bb   : > { %1273 = vst.msk [vmem:[%s1878_s24 + $0x10] sm:$0xf] %vm1268_vm3, %v1411_v18  ;;  %v1412_v46 = vpack.c.bf16 %v1233_v44, %v1233_v44 }
 0x1bc   : > { %1276 = vst.msk [vmem:[%s1878_s24 + $0x1c] sm:$0xf] %vm1268_vm3, %v1414_v45 }
 0x1bd   : > { %1274 = vst.msk [vmem:[%s1878_s24 + $0x14] sm:$0xf] %vm1268_vm3, %v1412_v46 }
 0x1be PF: > { %s14_s15 = sadd.s32 1, %s1642_s15  }
 0x1bf   : > { %p11_p4 = scmp.ge.s32.totalorder %s14_s15, 4  }
 0x1c1   :  { %13 = sbr.rel (!%p11_p4) target bundleno = 1 (0x1), region = 77 }

// kernel: _lambda_.3
= control target key start
LH: loop header
LB: loop body
LE: loop exit
PB: predicated region body
PF: predicated region fallthrough
CT: control target
= control target key end

     0   :  { %s3452_s0 = inlined_call_operand.vmem [shape: bf16[2,64,16], index: 0, kind: input, shape index: {}]   ;;  %s3453_s1 = inlined_call_operand.vmem [shape: bf16[16,10], index: 1, kind: input, shape index: {}]   ;;  %s3454_s2 = inlined_call_operand.vmem [shape: bf16[16,10], index: 2, kind: input, shape index: {}]   ;;  %s3455_s3 = inlined_call_operand.vmem [shape: f32[1,10], index: 3, kind: input, shape index: {}]   ;;  %s3456_s4 = inlined_call_operand.vmem [shape: f32[1,10], index: 4, kind: input, shape index: {}]   ;;  %s3457_s5 = inlined_call_operand.vmem [shape: f32[9,1,10], index: 5, kind: input, shape index: {}]   ;;  %s3458_s6 = inlined_call_operand.vmem [shape: f32[1,10], index: 6, kind: input, shape index: {}]   ;;  %s3459_s7 = inlined_call_operand.vmem [shape: bf16[10,16], index: 7, kind: input, shape index: {}]   ;;  %s3460_s8 = inlined_call_operand.vmem [shape: f32[1,16], index: 8, kind: input, shape index: {}]   ;;  %s3461_s9 = inlined_call_operand.vmem [shape: bf16[9,16,16], index: 9, kind: input, shape index: {}]   ;;  %s3462_s10 = inlined_call_operand.vmem [shape: f32[1,16], index: 10, kind: input, shape index: {}]   ;;  %s3463_s11 = inlined_call_operand.vmem [shape: f32[1,16], index: 11, kind: input, shape index: {}]   ;;  %s3464_s12 = inlined_call_operand.hbm [shape: f32[2,64,16], index: 12, kind: output, shape index: {}]  }
   0x1   :  { %3465 = sst [smem:[#allocation7_spill]] %s3452_s0 }
   0x2   :  { %17 = vsyncpa [#allocation5], 0 }
   0x3   :  { %19 = vsyncpa [#allocation5 + $0x1], 0  ;;  %s2806_s21 = smov 0   ;;  %s2808_s22 = smov 0  }
   0x4   :  { %s2810_s23 = smov 0   ;;  %s2812_s24 = smov 0  }
   0x5 LB: > { %s2827_s25 = sadd.s32 4294967295, %s2735_s24   ;;  %s2233_s26 = sadd.s32 4294967294, %s2735_s24   ;;  %s2735_s24 = sphi %s2812_s24, %s3472_s24   ;;  %s2731_s23 = sphi %s2810_s23, %s3471_s23   ;;  %s2727_s22 = sphi %s2808_s22, %s3470_s22   ;;  %s2723_s21 = sphi %s2806_s21, %s3469_s21  }
   0x6   : > { %s2831_s27 = sadd.s32 1, %s2735_s24   ;;  %s289_s28 = sadd.s32 1, %s2731_s23 }
   0x7   : > { %s286_s29 = ssub.s32 %s2735_s24, %s2831_s27  ;;  %p299_p0 = scmp.ne.s32.totalorder %s2731_s23, %s2727_s22 }
   0x8   : > { %p287_p1 = scmp.eq.s32.totalorder %s286_s29, 0  ;;  %p300_p2 = scmp.eq.s32.totalorder %s2827_s25, 1 }
   0x9   : > { %p305_p3 = scmp.ne.s32.totalorder %s2727_s22, %s2723_s21  ;;  %p306_p4 = scmp.eq.s32.totalorder %s2233_s26, 1 }
   0xa   : > { %s2842_s30 = scalar_select %p287_p1, %s2731_s23, %s289_s28  }
   0xb   : > { %p2844_p5 = por %p300_p2, %p299_p0  ;;  %p2848_p6 = por %p306_p4, %p305_p3 }
   0xc   : > { %p2236_p7 = scmp.ge.s32.totalorder %s2735_s24, 1  ;;  %p365_p8 = scmp.lt.s32.totalorder %s2735_s24, 3 }
   0xe   : > { %p366_p9 = pnand %p2236_p7, %p365_p8 }
   0xf   : > { %v2637_v0 = vld [vmem:[%s3453_s1] sm:$0xff] (!%p366_p9)   ;;  %p407_p10 = scmp.lt.s32.totalorder (!%p366_p9), %s2827_s25, 1  ;;  %s3468_s0 = sld [smem:[#allocation7_spill]] (!%p366_p9)  ;;  %vm464_vm0 = vcmask (!%p366_p9), 130048   ;;  %vm622_vm1 = vcmask (!%p366_p9), 80896   ;;  %vm624_vm2 = vcmask (!%p366_p9), 74752  }
  0x10   : > { %369 = sbr.rel (%p366_p9) target bundleno = 884 (0x374), region = 68  ;;  %v2642_v1 = vld [vmem:[%s3454_s2] sm:$0xff] (!%p366_p9)   ;;  %2410 = vmatprep.subr.bf16.mxu0 (!%p366_p9), %v2637_v0  ;;  %v2737_v6 = vmov (!%p366_p9), 0.0   ;;  %vm1066_vm3 = vcmask (!%p366_p9), 1044480   ;;  %vm1144_vm4 = vcmask (!%p366_p9), 123904   ;;  %s404_s16 = sand.u32 (!%p366_p9), 1, %s2727_s22  }
  0x11   : > { %2411 = vmatpush3.bf16.msra.mxu0 (!%p366_p9), %v2637_v0  ;;  %630 = vst.msk [vmem:[#allocation2 + $0x30] sm:$0xff] (!%p366_p9), %vm622_vm1, %v2737_v6  ;;  %623 = vst.msk [vmem:[#allocation2] sm:$0xff] (!%p366_p9), %vm622_vm1, %v2737_v6  ;;  %v2643_v7 = vld [vmem:[%s3459_s7] sm:$0x1f] (!%p366_p9)   ;;  %v2996_v43 = vld [vmem:[%s3457_s5 + $0x5] ss:$0 sm:$0xff] (!%p366_p9) }
  0x12   : > { %2420 = vmatprep.subr.bf16.mxu0 (!%p366_p9), %v2642_v1  ;;  %631 = vst.msk [vmem:[#allocation2 + $0x38] sm:$0x3] (!%p366_p9), %vm624_vm2, %v2737_v6  ;;  %625 = vst.msk [vmem:[#allocation2 + $0x8] sm:$0x3] (!%p366_p9), %vm624_vm2, %v2737_v6  ;;  %v1068_v8 = vsel (!%p366_p9), %vm1066_vm3, %v2643_v7, 0  ;;  %s2237_s26 = sshll.u32 (!%p366_p9), %s404_s16, 6 }
  0x13   : > { %626 = vst.msk [vmem:[#allocation2 + $0x10] sm:$0xff] (!%p366_p9), %vm622_vm1, %v2737_v6  ;;  %628 = vst.msk [vmem:[#allocation2 + $0x20] sm:$0xff] (!%p366_p9), %vm622_vm1, %v2737_v6  ;;  %v2240_v9 = vld [vmem:[%s3455_s3] ss:$0 sm:$0xff] (!%p366_p9)  ;;  %v2963_v11 = vld [vmem:[%s3457_s5 + $0x1] ss:$0 sm:$0xff] (!%p366_p9) }
  0x14   : > { %627 = vst.msk [vmem:[#allocation2 + $0x18] sm:$0x3] (!%p366_p9), %vm624_vm2, %v2737_v6  ;;  %629 = vst.msk [vmem:[#allocation2 + $0x28] sm:$0x3] (!%p366_p9), %vm624_vm2, %v2737_v6  ;;  %v2958_v10 = vld [vmem:[%s3457_s5] ss:$0 sm:$0xff] (!%p366_p9) }
  0x15   : > { %632 = vst.msk [vmem:[#allocation2 + $0x40] sm:$0xff] (!%p366_p9), %vm622_vm1, %v2737_v6  ;;  %634 = vst.msk [vmem:[#allocation2 + $0x50] sm:$0xff] (!%p366_p9), %vm622_vm1, %v2737_v6  ;;  %v2971_v23 = vld [vmem:[%s3457_s5 + $0x2] ss:$0 sm:$0xff] (!%p366_p9)  ;;  %v2980_v31 = vld [vmem:[%s3457_s5 + $0x3] ss:$0 sm:$0xff] (!%p366_p9) }
  0x16   : > { %633 = vst.msk [vmem:[#allocation2 + $0x48] sm:$0x3] (!%p366_p9), %vm624_vm2, %v2737_v6  ;;  %635 = vst.msk [vmem:[#allocation2 + $0x58] sm:$0x3] (!%p366_p9), %vm624_vm2, %v2737_v6  ;;  %v2988_v38 = vld [vmem:[%s3457_s5 + $0x4] ss:$0 sm:$0xff] (!%p366_p9) }
  0x17   : > { %s408_s19 = scalar_select %p407_p10, %s2827_s25, 1  ;;  %636 = vst.msk [vmem:[#allocation2 + $0x60] sm:$0xff] %vm622_vm1, %v2737_v6  ;;  %638 = vst.msk [vmem:[#allocation2 + $0x70] sm:$0xff] %vm622_vm1, %v2737_v6  ;;  %v3029_v0 = vld [vmem:[%s3457_s5 + $0x6] ss:$0 sm:$0xff] }
  0x18   : > { %637 = vst.msk [vmem:[#allocation2 + $0x68] sm:$0x3] %vm624_vm2, %v2737_v6  ;;  %639 = vst.msk [vmem:[#allocation2 + $0x78] sm:$0x3] %vm624_vm2, %v2737_v6  ;;  %v653_v12 = vld [vmem:[#allocation2] sm:$0xff]  ;;  %s3382_s28 = scalar_lea.vmem [#allocation4], %s2237_s26 }
  0x19   : > { %s2348_s20 = sshll.u32 %s408_s19, 5  ;;  %640 = vst.msk [vmem:[#allocation2 + $0x80] sm:$0xff] %vm622_vm1, %v2737_v6  ;;  %642 = vst.msk [vmem:[#allocation2 + $0x90] sm:$0xff] %vm622_vm1, %v2737_v6  ;;  %v684_v13 = vld [vmem:[#allocation2 + $0x1] sm:$0xff]  ;;  %v668_v19 = vmul.f32 %v2958_v10, %v653_v12  ;;  %s2171_s15 = sshll.u32 %s3382_s28, 4  ;;  %s3401_s15 = int_to_ptr.vmem [resolvable:$true] %s2171_s15 }
  0x1a   : > { %s411_s29 = scalar_lea.vmem %s3468_s0, %s2348_s20  ;;  %641 = vst.msk [vmem:[#allocation2 + $0x88] sm:$0x3] %vm624_vm2, %v2737_v6  ;;  %643 = vst.msk [vmem:[#allocation2 + $0x98] sm:$0x3] %vm624_vm2, %v2737_v6  ;;  %v700_v20 = vmul.f32 %v2963_v11, %v684_v13  ;;  %v716_v24 = vld [vmem:[#allocation2 + $0x2] sm:$0xff]  ;;  %s2673_s20 = scalar_lea.vmem %s3401_s15, 1024 }
  0x1b   : > { %v2865_v2 = vld [vmem:[%s411_s29] sm:$0xff]   ;;  %v2867_v3 = vld [vmem:[%s411_s29 + $0x8] sm:$0xff]   ;;  %v2869_v4 = vld [vmem:[%s411_s29 + $0x10] sm:$0xff]   ;;  %1143 = vst.msk [vmem:[#allocation3] sm:$0xff] %vm464_vm0, %v2737_v6  ;;  %v732_v27 = vmul.f32 %v2971_v23, %v716_v24  ;;  %p2674_p11 = scmp.ne.s32.totalorder %s3401_s15, %s2673_s20  ;;  %s2738_s26 = smov [#allocation4]  }
  0x1c   : > { %2412 = vmatprep.mubr.msk.bf16.mxu0 %vm464_vm0, %v2865_v2  ;;  %v2877_v5 = vld [vmem:[%s411_s29 + $0x18] sm:$0xff]   ;;  %1146 = vst.msk [vmem:[#allocation3 + $0x10] sm:$0xff] %vm464_vm0, %v2737_v6  ;;  %1148 = vst.msk [vmem:[#allocation3 + $0x20] sm:$0xff] %vm464_vm0, %v2737_v6  ;;  %v708_v26 = vadd.f32 %v700_v20, %v668_v19  ;;  %s2349_s29 = sshll.u32 %s2827_s25, 10  ;;  %s3411_s25 = scalar_lea.sflag [#allocation5], %s404_s16 }
  0x1d   : > { %2413 = vmatmul.mubr.msk.bf16.vlgmr.msra.gmra.mrb[0].mxu0 %vm464_vm0, %v2867_v3  ;;  %1150 = vst.msk [vmem:[#allocation3 + $0x30] sm:$0xff] %vm464_vm0, %v2737_v6  ;;  %1152 = vst.msk [vmem:[#allocation3 + $0x40] sm:$0xff] %vm464_vm0, %v2737_v6  ;;  %s3399_s19 = scalar_lea.hbm %s3464_s12, %s2349_s29  ;;  %p2675_p12 = pnand %p2674_p11, %p2844_p5 }
  0x1e   : > { %2416 = vmatprep.mubr.msk.bf16.mxu0 %vm464_vm0, %v2869_v4  ;;  %2421 = vmatpush3.bf16.msra.mxu0 %v2642_v1  ;;  %1154 = vst.msk [vmem:[#allocation3 + $0x50] sm:$0xff] %vm464_vm0, %v2737_v6  ;;  %1156 = vst.msk [vmem:[#allocation3 + $0x60] sm:$0xff] %vm464_vm0, %v2737_v6  ;;  %v740_v35 = vadd.f32 %v732_v27, %v708_v26  ;;  %s2677_s29 = sshll.u32 %s2738_s26, 4  ;;  %s2678_s29 = int_to_ptr.vmem [resolvable:$false] %s2677_s29 }
  0x1f   : > { %1158 = vst.msk [vmem:[#allocation3 + $0x70] sm:$0xff] %vm464_vm0, %v2737_v6  ;;  %1160 = vst.msk [vmem:[#allocation3 + $0x80] sm:$0xff] %vm464_vm0, %v2737_v6  ;;  %2594 = vmatprep.subr.msk.bf16.mxu0 %vm1066_vm3, %v2643_v7  ;;  %p2676_p13 = pneg %p2675_p12  ;;  %s2679_s17 = scalar_lea.vmem %s2678_s29, 2048 }
  0x20   : > { %1162 = vst.msk [vmem:[#allocation3 + $0x90] sm:$0xff] %vm464_vm0, %v2737_v6  ;;  %p2680_p0 = scmp.lt.s32.totalorder %s3401_s15, %s2678_s29  ;;  %p2681_p1 = scmp.lt.s32.totalorder %s2679_s17, %s2673_s20 }
  0x21   : > { %1151 = vst.msk [vmem:[#allocation3 + $0x38] sm:$0x3] %vm1144_vm4, %v2737_v6  ;;  %1145 = vst.msk [vmem:[#allocation3 + $0x8] sm:$0x3] %vm1144_vm4, %v2737_v6 }
  0x22   : > { %1147 = vst.msk [vmem:[#allocation3 + $0x18] sm:$0x3] %vm1144_vm4, %v2737_v6  ;;  %1149 = vst.msk [vmem:[#allocation3 + $0x28] sm:$0x3] %vm1144_vm4, %v2737_v6  ;;  %p2682_p2 = por %p2681_p1, %p2680_p0 }
  0x23   : > { %1153 = vst.msk [vmem:[#allocation3 + $0x48] sm:$0x3] %vm1144_vm4, %v2737_v6  ;;  %1155 = vst.msk [vmem:[#allocation3 + $0x58] sm:$0x3] %vm1144_vm4, %v2737_v6 }
  0x24   : > { %1157 = vst.msk [vmem:[#allocation3 + $0x68] sm:$0x3] %vm1144_vm4, %v2737_v6  ;;  %1159 = vst.msk [vmem:[#allocation3 + $0x78] sm:$0x3] %vm1144_vm4, %v2737_v6  ;;  %p2683_p3 = pnand %p2682_p2, %p2676_p13 }
  0x25   : > { %2417 = vmatmul.mubr.msk.bf16.gmra.mrb[4].mxu0 %vm464_vm0, %v2877_v5  ;;  %1161 = vst.msk [vmem:[#allocation3 + $0x88] sm:$0x3] %vm1144_vm4, %v2737_v6  ;;  %1163 = vst.msk [vmem:[#allocation3 + $0x98] sm:$0x3] %vm1144_vm4, %v2737_v6  ;;  %v2647_v6 = vld [vmem:[%s3461_s9] sm:$0xff]  }
  0x26   : > { %2422 = vmatprep.mubr.msk.bf16.mxu0 %vm464_vm0, %v2865_v2 }
  0x2d   : > { %2423 = vmatmul.mubr.msk.bf16.vlgmr.msra.gmra.mrb[8].mxu0 %vm464_vm0, %v2867_v3 }
  0x2e   : > { %2426 = vmatprep.mubr.msk.bf16.mxu0 %vm464_vm0, %v2869_v4  ;;  %2431 = vmatpush3.bf16.msra.mxu0 %v1068_v8 }
  0x35   : > { %2427 = vmatmul.mubr.msk.bf16.gmra.mrb[12].mxu0 %vm464_vm0, %v2877_v5 }
  0xf0   : > { %v2414_v14 = vpop.f32.mrb[0].mxu0 }
  0xf1   : > { %v520_v15 = vadd.f32 %v2414_v14, %v2240_v9  ;;  %v511_v16 = vpop.f32.mrb[1].mxu0 }
  0xf2   : > { %v512_v17 = vadd.f32 %v2240_v9, %v511_v16  ;;  %v2415_v18 = vpop.f32.mrb[2].mxu0 }
  0xf3   : > { %647 = vst.msk [vmem:[#allocation2 + $0x31] sm:$0xff] %vm622_vm1, %v520_v15  ;;  %v523_v21 = vadd.f32 %v2415_v18, %v2240_v9  ;;  %v514_v22 = vpop.f32.mrb[3].mxu0  ;;  %v3046_v18 = vld [vmem:[%s3457_s5 + $0x7] ss:$0 sm:$0xff] }
  0xf4   : > { %645 = vst.msk [vmem:[#allocation2 + $0x11] sm:$0xff] %vm622_vm1, %v512_v17  ;;  %v515_v25 = vadd.f32 %v2240_v9, %v514_v22 }
  0xf5   : > { %648 = vst.msk [vmem:[#allocation2 + $0x41] sm:$0xff] %vm622_vm1, %v523_v21 }
  0xf6   : > { %646 = vst.msk [vmem:[#allocation2 + $0x21] sm:$0xff] %vm622_vm1, %v515_v25 }
  0xf8   : > { %v2418_v28 = vpop.f32.mrb[4].mxu0 }
  0xf9   : > { %v536_v29 = vadd.f32 %v2418_v28, %v2240_v9  ;;  %v527_v30 = vpop.f32.mrb[5].mxu0 }
  0xfa   : > { %v528_v32 = vadd.f32 %v2240_v9, %v527_v30  ;;  %v2419_v33 = vpop.f32.mrb[6].mxu0  ;;  %v2982_v34 = vld [vmem:[#allocation2 + $0x30] sm:$0xff]  ;;  %v3064_v30 = vld [vmem:[%s3457_s5 + $0x8] ss:$0 sm:$0xff] }
  0xfb   : > { %651 = vst.msk [vmem:[#allocation2 + $0x71] sm:$0xff] %vm622_vm1, %v536_v29  ;;  %v539_v36 = vadd.f32 %v2419_v33, %v2240_v9  ;;  %v530_v37 = vpop.f32.mrb[7].mxu0  ;;  %v748_v39 = vld [vmem:[#allocation2 + $0x10] sm:$0xff]  ;;  %v671_v49 = vmul.f32 %v2958_v10, %v2982_v34  ;;  %v766_v62 = vmul.f32 %v2980_v31, %v2982_v34 }
  0xfc   : > { %v780_v40 = vld [vmem:[#allocation2 + $0x11] sm:$0xff]  ;;  %649 = vst.msk [vmem:[#allocation2 + $0x51] sm:$0xff] %vm622_vm1, %v528_v32  ;;  %v531_v41 = vadd.f32 %v2240_v9, %v530_v37  ;;  %v764_v44 = vmul.f32 %v2980_v31, %v748_v39  ;;  %v3019_v59 = vld [vmem:[#allocation2 + $0x40] sm:$0xff]  ;;  %v669_v16 = vmul.f32 %v2958_v10, %v748_v39 }
  0xfd   : > { %v2991_v42 = vld [vmem:[#allocation2 + $0x31] sm:$0xff]  ;;  %652 = vst.msk [vmem:[#allocation2 + $0x81] sm:$0xff] %vm622_vm1, %v539_v36  ;;  %v655_v46 = vld [vmem:[#allocation2 + $0x20] sm:$0xff]  ;;  %v796_v54 = vmul.f32 %v2988_v38, %v780_v40  ;;  %v767_v21 = vmul.f32 %v2980_v31, %v3019_v59  ;;  %v701_v24 = vmul.f32 %v2963_v11, %v780_v40  ;;  %v863_v26 = vmul.f32 %v3029_v0, %v3019_v59 }
  0xfe   : > { %v812_v45 = vld [vmem:[#allocation2 + $0x12] sm:$0xff]  ;;  %v3000_v47 = vld [vmem:[#allocation2 + $0x21] sm:$0xff]  ;;  %650 = vst.msk [vmem:[#allocation2 + $0x61] sm:$0xff] %vm622_vm1, %v531_v41  ;;  %v670_v50 = vmul.f32 %v2958_v10, %v655_v46  ;;  %v772_v53 = vadd.f32 %v764_v44, %v740_v35  ;;  %v703_v55 = vmul.f32 %v2963_v11, %v2991_v42  ;;  %v798_v63 = vmul.f32 %v2988_v38, %v2991_v42 }
  0xff   : > { %v3002_v48 = vld [vmem:[#allocation2 + $0x22] sm:$0xff]  ;;  %v702_v51 = vmul.f32 %v2963_v11, %v3000_v47  ;;  %v3010_v52 = vld [vmem:[#allocation2 + $0x32] sm:$0xff]  ;;  %v828_v61 = vmul.f32 %v2996_v43, %v812_v45  ;;  %v861_v14 = vmul.f32 %v3029_v0, %v655_v46  ;;  %v893_v28 = vmul.f32 %v3046_v18, %v3000_v47 }
 0x100   : > { %v3015_v56 = vpop.f32.mrb[8].mxu0  ;;  %v734_v58 = vmul.f32 %v2971_v23, %v3002_v48  ;;  %v804_v60 = vadd.f32 %v796_v54, %v772_v53  ;;  %v711_v7 = vadd.f32 %v703_v55, %v671_v49  ;;  %v735_v8 = vmul.f32 %v2971_v23, %v3010_v52  ;;  %v3035_v12 = vld [vmem:[#allocation2 + $0x41] sm:$0xff]  ;;  %v3078_v49 = vld [vmem:[%s3458_s6] ss:$0 sm:$0xff] }
 0x101   : > { %v710_v57 = vadd.f32 %v702_v51, %v670_v50  ;;  %v3031_v1 = vpop.f32.mrb[9].mxu0  ;;  %v830_v17 = vmul.f32 %v2996_v43, %v3010_v52  ;;  %v3048_v19 = vld [vmem:[#allocation2 + $0x42] sm:$0xff]  ;;  %v799_v33 = vmul.f32 %v2988_v38, %v3035_v12  ;;  %v709_v35 = vadd.f32 %v701_v24, %v669_v16 }
 0x102   : > { %v836_v13 = vadd.f32 %v828_v61, %v804_v60  ;;  %v3038_v15 = vpop.f32.mrb[10].mxu0  ;;  %v743_v20 = vadd.f32 %v735_v8, %v711_v7  ;;  %v733_v36 = vmul.f32 %v2971_v23, %v812_v45  ;;  %v925_v40 = vmul.f32 %v3064_v30, %v3002_v48 }
 0x103   : > { %v742_v9 = vadd.f32 %v734_v58, %v710_v57  ;;  %v3052_v22 = vpop.f32.mrb[11].mxu0  ;;  %v3059_v29 = vld [vmem:[#allocation2 + $0x50] sm:$0xff]  ;;  %v831_v41 = vmul.f32 %v2996_v43, %v3048_v19  ;;  %v765_v54 = vmul.f32 %v2980_v31, %v655_v46  ;;  %v895_v58 = vmul.f32 %v3046_v18, %v3035_v12 }
 0x104   : > { %v869_v27 = vadd.f32 %v861_v14, %v836_v13  ;;  %v775_v32 = vadd.f32 %v767_v21, %v743_v20  ;;  %v864_v51 = vmul.f32 %v3029_v0, %v3059_v29  ;;  %v3082_v45 = vld [vmem:[#allocation2 + $0x51] sm:$0xff]  ;;  %v741_v53 = vadd.f32 %v733_v36, %v709_v35 }
 0x105   : > { %v774_v25 = vadd.f32 %v766_v62, %v742_v9  ;;  %v3073_v44 = vld [vmem:[#allocation2 + $0x60] sm:$0xff]  ;;  %v927_v60 = vmul.f32 %v3064_v30, %v3048_v19  ;;  %v3091_v62 = vld [vmem:[#allocation2 + $0x52] sm:$0xff]  ;;  %v797_v9 = vmul.f32 %v2988_v38, %v3000_v47  ;;  %v896_v20 = vmul.f32 %v3046_v18, %v3082_v45 }
 0x106   : > { %v901_v39 = vadd.f32 %v893_v28, %v869_v27  ;;  %v807_v50 = vadd.f32 %v799_v33, %v775_v32  ;;  %v3085_v55 = vld [vmem:[#allocation2 + $0x61] sm:$0xff]  ;;  %v773_v8 = vadd.f32 %v765_v54, %v741_v53  ;;  %v674_v46 = vmul.f32 %v2958_v10, %v3073_v44 }
 0x107   : > { %v806_v37 = vadd.f32 %v798_v63, %v774_v25  ;;  %v3099_v13 = vld [vmem:[#allocation2 + $0x62] sm:$0xff]  ;;  %v706_v21 = vmul.f32 %v2963_v11, %v3085_v55  ;;  %v928_v25 = vmul.f32 %v3064_v30, %v3091_v62  ;;  %v829_v28 = vmul.f32 %v2996_v43, %v3002_v48 }
 0x108   : > { %v933_v61 = vadd.f32 %v925_v40, %v901_v39  ;;  %v3093_v63 = vpop.f32.mrb[12].mxu0  ;;  %v839_v7 = vadd.f32 %v831_v41, %v807_v50  ;;  %v805_v27 = vadd.f32 %v797_v9, %v773_v8  ;;  %v3123_v39 = vld [vmem:[#allocation2 + $0x71] sm:$0xff]  ;;  %v862_v50 = vmul.f32 %v3029_v0, %v2982_v34  ;;  %v851_v9 = vld [vmem:[#allocation2 + $0x80] sm:$0xff] }
 0x109   : > { %v838_v57 = vadd.f32 %v830_v17, %v806_v37  ;;  %v3101_v14 = vpop.f32.mrb[13].mxu0  ;;  %v714_v36 = vadd.f32 %v706_v21, %v674_v46  ;;  %v738_v37 = vmul.f32 %v2971_v23, %v3099_v13  ;;  %v894_v48 = vmul.f32 %v3046_v18, %v2991_v42 }
 0x10a   : > { %v3104_v17 = vadd.f32 %v3078_v49, %v933_v61  ;;  %v3110_v24 = vpop.f32.mrb[14].mxu0  ;;  %v872_v47 = vadd.f32 %v864_v51, %v839_v7  ;;  %v837_v41 = vadd.f32 %v829_v28, %v805_v27  ;;  %v926_v8 = vmul.f32 %v3064_v30, %v3010_v52 }
 0x10b   : > { %v871_v16 = vadd.f32 %v863_v26, %v838_v57  ;;  %v3116_v26 = vld [vmem:[#allocation2 + $0x70] sm:$0xff]  ;;  %v3118_v32 = vpop.f32.mrb[15].mxu0  ;;  %v746_v54 = vadd.f32 %v738_v37, %v714_v36  ;;  %v802_v34 = vmul.f32 %v2988_v38, %v3123_v39  ;;  %v883_v36 = vld [vmem:[#allocation2 + $0x81] sm:$0xff] }
 0x10c   : > { %v964_v35 = vmul.f32 0.044715, %v3104_v17  ;;  %v904_v40 = vadd.f32 %v896_v20, %v872_v47  ;;  %v770_v57 = vmul.f32 %v2980_v31, %v3116_v26  ;;  %v870_v7 = vadd.f32 %v862_v50, %v837_v41 }
 0x10d   : > { %v903_v33 = vadd.f32 %v895_v58, %v871_v16  ;;  %v3132_v58 = vld [vmem:[#allocation2 + $0x72] sm:$0xff]  ;;  %v672_v16 = vmul.f32 %v2958_v10, %v3019_v59  ;;  %v704_v47 = vmul.f32 %v2963_v11, %v3035_v12  ;;  %v768_v12 = vmul.f32 %v2980_v31, %v3059_v29 }
 0x10e   : > { %v972_v53 = vmul.f32 %v964_v35, %v3104_v17  ;;  %v936_v61 = vadd.f32 %v928_v25, %v904_v40  ;;  %v778_v46 = vadd.f32 %v770_v57, %v746_v54  ;;  %v902_v21 = vadd.f32 %v894_v48, %v870_v7  ;;  %v915_v54 = vld [vmem:[#allocation2 + $0x82] sm:$0xff] }
 0x10f   : > { %v935_v51 = vadd.f32 %v927_v60, %v903_v33  ;;  %v834_v52 = vmul.f32 %v2996_v43, %v3132_v58  ;;  %v867_v33 = vmul.f32 %v3029_v0, %v851_v9  ;;  %v712_v37 = vadd.f32 %v704_v47, %v672_v16 }
 0x110   : > { %v980_v60 = vmul.f32 %v972_v53, %v3104_v17  ;;  %v3145_v20 = vadd.f32 %v3078_v49, %v936_v61  ;;  %v810_v28 = vadd.f32 %v802_v34, %v778_v46  ;;  %v934_v59 = vadd.f32 %v926_v8, %v902_v21 }
 0x111   : > { %v3139_v42 = vadd.f32 %v3078_v49, %v935_v51  ;;  %v736_v40 = vmul.f32 %v2971_v23, %v3048_v19  ;;  %v899_v8 = vmul.f32 %v3046_v18, %v883_v36  ;;  %v800_v46 = vmul.f32 %v2988_v38, %v3082_v45 }
 0x112   : > { %v988_v27 = vadd.f32 %v980_v60, %v3104_v17  ;;  %v967_v35 = vmul.f32 0.044715, %v3145_v20  ;;  %v842_v48 = vadd.f32 %v834_v52, %v810_v28  ;;  %v3162_v53 = vadd.f32 %v3078_v49, %v934_v59 }
 0x113   : > { %v966_v25 = vmul.f32 0.044715, %v3139_v42  ;;  %v744_v57 = vadd.f32 %v736_v40, %v712_v37  ;;  %v931_v52 = vmul.f32 %v3064_v30, %v915_v54  ;;  %v832_v28 = vmul.f32 %v2996_v43, %v3091_v62 }
 0x114   : > { %v996_v50 = vmul.f32 0.7978846, %v988_v27  ;;  %v975_v51 = vmul.f32 %v967_v35, %v3145_v20  ;;  %v875_v7 = vadd.f32 %v867_v33, %v842_v48  ;;  %v965_v34 = vmul.f32 0.044715, %v3162_v53 }
 0x115   : > { %v974_v41 = vmul.f32 %v966_v25, %v3139_v42  ;;  %v776_v60 = vadd.f32 %v768_v12, %v744_v57  ;;  %v865_v59 = vmul.f32 %v3029_v0, %v3073_v44  ;;  %v675_v37 = vmul.f32 %v2958_v10, %v3116_v26 }
 0x116   : > { %v983_v19 = vmul.f32 %v975_v51, %v3145_v20  ;;  %2657 = vtanh.f32 %v996_v50  ;;  %v907_v21 = vadd.f32 %v899_v8, %v875_v7  ;;  %v973_v25 = vmul.f32 %v965_v34, %v3162_v53 }
 0x117   : > { %v982_v61 = vmul.f32 %v974_v41, %v3139_v42  ;;  %v808_v27 = vadd.f32 %v800_v46, %v776_v60  ;;  %v707_v48 = vmul.f32 %v2963_v11, %v3123_v39  ;;  %v897_v51 = vmul.f32 %v3046_v18, %v3085_v55 }
 0x118   : > { %v991_v47 = vadd.f32 %v983_v19, %v3145_v20  ;;  %v939_v35 = vadd.f32 %v931_v52, %v907_v21  ;;  %v981_v41 = vmul.f32 %v973_v25, %v3162_v53  ;;  %v739_v57 = vmul.f32 %v2971_v23, %v3132_v58  ;;  %v852_v52 = vld [vmem:[#allocation2 + $0x90] sm:$0xff] }
 0x119   : > { %v990_v16 = vadd.f32 %v982_v61, %v3139_v42  ;;  %v840_v50 = vadd.f32 %v832_v28, %v808_v27  ;;  %v715_v8 = vadd.f32 %v707_v48, %v675_v37  ;;  %v929_v34 = vmul.f32 %v3064_v30, %v3099_v13  ;;  %v884_v25 = vld [vmem:[#allocation2 + $0x91] sm:$0xff] }
 0x11a   : > { %v999_v40 = vmul.f32 0.7978846, %v991_v47  ;;  %v3184_v12 = vadd.f32 %v3078_v49, %v939_v35  ;;  %v989_v61 = vadd.f32 %v981_v41, %v3162_v53  ;;  %v771_v21 = vmul.f32 %v2980_v31, %v851_v9  ;;  %v916_v37 = vld [vmem:[#allocation2 + $0x92] sm:$0xff]  ;;  %v3204_v9 = vld [vmem:[%s3456_s4] ss:$0 sm:$0xff] }
 0x11b   : > { %v998_v33 = vmul.f32 0.7978846, %v990_v16  ;;  %v873_v7 = vadd.f32 %v865_v59, %v840_v50  ;;  %v747_v16 = vadd.f32 %v739_v57, %v715_v8  ;;  %v803_v47 = vmul.f32 %v2988_v38, %v883_v36 }
 0x11c   : > { %v970_v19 = vmul.f32 0.044715, %v3184_v12  ;;  %v997_v60 = vmul.f32 0.7978846, %v989_v61  ;;  %v673_v27 = vmul.f32 %v2958_v10, %v3059_v29  ;;  %v705_v28 = vmul.f32 %v2963_v11, %v3082_v45 }
 0x11d   : > { %2659 = vtanh.f32 %v998_v33  ;;  %v905_v46 = vadd.f32 %v897_v51, %v873_v7  ;;  %v779_v59 = vadd.f32 %v771_v21, %v747_v16  ;;  %v868_v36 = vmul.f32 %v3029_v0, %v852_v52 }
 0x11e   : > { %2661 = vtanh.f32 %v999_v40  ;;  %v978_v33 = vmul.f32 %v970_v19, %v3184_v12  ;;  %v713_v41 = vadd.f32 %v705_v28, %v673_v27  ;;  %v737_v10 = vmul.f32 %v2971_v23, %v3091_v62 }
 0x11f   : > { %2663 = vtanh.f32 %v997_v60  ;;  %v937_v35 = vadd.f32 %v929_v34, %v905_v46  ;;  %v811_v29 = vadd.f32 %v803_v47, %v779_v59  ;;  %v835_v45 = vmul.f32 %v2996_v43, %v915_v54 }
 0x120   : > { %v2658_v40 = vpop.eup %2657  ;;  %v900_v50 = vmul.f32 %v3046_v18, %v884_v25  ;;  %v600_v48 = vadd.f32 %v3015_v56, %v3204_v9  ;;  %v932_v51 = vmul.f32 %v3064_v30, %v916_v37  ;;  %v745_v57 = vadd.f32 %v737_v10, %v713_v41 }
 0x121   : > { %v3210_v11 = vadd.f32 %v3078_v49, %v937_v35  ;;  %v769_v61 = vmul.f32 %v2980_v31, %v3073_v44  ;;  %v592_v23 = vadd.f32 %v3204_v9, %v3031_v1  ;;  %v986_v62 = vmul.f32 %v978_v33, %v3184_v12 }
 0x122   : > { %v843_v8 = vadd.f32 %v835_v45, %v811_v29  ;;  %v958_v19 = vmul.f32 0.5, %v3139_v42  ;;  %v603_v56 = vadd.f32 %v3038_v15, %v3204_v9  ;;  %v801_v60 = vmul.f32 %v2988_v38, %v3085_v55 }
 0x123   : > { %v968_v7 = vmul.f32 0.044715, %v3210_v11  ;;  %v777_v34 = vadd.f32 %v769_v61, %v745_v57  ;;  %v1012_v44 = vadd.f32 1.0, %v2658_v40  ;;  %v959_v1 = vmul.f32 0.5, %v3145_v20 }
 0x124   : > { %v876_v16 = vadd.f32 %v868_v36, %v843_v8  ;;  %v833_v42 = vmul.f32 %v2996_v43, %v3099_v13  ;;  %v956_v15 = vmul.f32 0.5, %v3104_v17  ;;  %v994_v27 = vadd.f32 %v986_v62, %v3184_v12 }
 0x125   : > { %v976_v52 = vmul.f32 %v968_v7, %v3210_v11  ;;  %v809_v47 = vadd.f32 %v801_v60, %v777_v34  ;;  %v957_v55 = vmul.f32 0.5, %v3162_v53  ;;  %v866_v20 = vmul.f32 %v3029_v0, %v3116_v26 }
 0x126   : > { %v908_v28 = vadd.f32 %v900_v50, %v876_v16  ;;  %v1020_v37 = vmul.f32 %v1012_v44, %v956_v15  ;;  %v898_v43 = vmul.f32 %v3046_v18, %v3123_v39  ;;  %v595_v10 = vadd.f32 %v3204_v9, %v3052_v22 }
 0x127   : > { %v2660_v54 = vpop.eup %2659  ;;  %v841_v33 = vadd.f32 %v833_v42, %v809_v47  ;;  %v984_v17 = vmul.f32 %v976_v52, %v3210_v11  ;;  %v1002_v53 = vmul.f32 0.7978846, %v994_v27  ;;  %v930_v50 = vmul.f32 %v3064_v30, %v3132_v58 }
 0x128   : > { %v2662_v46 = vpop.eup %2661  ;;  %v1014_v31 = vadd.f32 1.0, %v2660_v54  ;;  %v940_v40 = vadd.f32 %v932_v51, %v908_v28  ;;  %v1028_v51 = vmul.f32 %v1020_v37, %v592_v23  ;;  %v616_v16 = vadd.f32 %v3093_v63, %v3204_v9 }
 0x129   : > { %v1015_v21 = vadd.f32 1.0, %v2662_v46  ;;  %v2664_v35 = vpop.eup %2663  ;;  %v874_v41 = vadd.f32 %v866_v20, %v841_v33  ;;  %v992_v39 = vadd.f32 %v984_v17, %v3210_v11  ;;  %2665 = vtanh.f32 %v1002_v53 }
 0x12a   : > { %v1022_v25 = vmul.f32 %v1014_v31, %v958_v19  ;;  %v1013_v36 = vadd.f32 1.0, %v2664_v35  ;;  %v955_v29 = vadd.f32 %v3078_v49, %v940_v40  ;;  %v960_v27 = vmul.f32 0.5, %v3210_v11  ;;  %v2274_v11 = vld [vmem:[%s3460_s8] ss:$0 sm:$0xff] }
 0x12b   : > { %v1023_v38 = vmul.f32 %v1015_v21, %v959_v1  ;;  %v906_v26 = vadd.f32 %v898_v43, %v874_v41  ;;  %v1000_v8 = vmul.f32 0.7978846, %v992_v39  ;;  %v619_v21 = vadd.f32 %v3110_v24, %v3204_v9 }
 0x12c   : > { %v1030_v59 = vmul.f32 %v1022_v25, %v600_v48  ;;  %v1021_v0 = vmul.f32 %v1013_v36, %v957_v55  ;;  %v971_v48 = vmul.f32 0.044715, %v955_v29  ;;  %v963_v52 = vmul.f32 0.5, %v955_v29 }
 0x12d   : > { %v1031_v13 = vmul.f32 %v1023_v38, %v603_v56  ;;  %v938_v57 = vadd.f32 %v930_v50, %v906_v26  ;;  %2667 = vtanh.f32 %v1000_v8  ;;  %v611_v63 = vadd.f32 %v3204_v9, %v3118_v32  ;;  %v2645_v32 = vld [vmem:[%s3461_s9 + $0x18] sm:$0xff]  }
 0x12e   : > { %v1029_v18 = vmul.f32 %v1021_v0, %v595_v10  ;;  %v979_v61 = vmul.f32 %v971_v48, %v955_v29  ;;  %2470 = vmatprep.subr.bf16.mxu1 %v2645_v32  ;;  %v423_v43 = vunpack.c.l.bf16 %v2867_v3  ;;  %v424_v10 = vunpack.c.h.bf16 %v2867_v3  ;;  %v1187_v3 = vld [vmem:[#allocation3 + $0x1] sm:$0xff] }
 0x12f   : > { %v1037_v45 = vpack.c.bf16 %v1031_v13, %v1030_v59  ;;  %v953_v22 = vadd.f32 %v3078_v49, %v938_v57  ;;  %v962_v49 = vmul.f32 0.5, %v3184_v12  ;;  %v608_v12 = vadd.f32 %v3204_v9, %v3101_v14  ;;  %v2644_v14 = vld [vmem:[%s3461_s9 + $0x8] sm:$0xff]   ;;  %v2646_v9 = vld [vmem:[%s3461_s9 + $0x20] sm:$0xff]   ;;  %2471 = vmatpush3.bf16.msra.mxu1 %v2645_v32 }
 0x130   : > { %v1036_v62 = vpack.c.bf16 %v1029_v18, %v1028_v51  ;;  %v987_v7 = vmul.f32 %v979_v61, %v955_v29  ;;  %2440 = vmatprep.subr.bf16.mxu0 %v2644_v14  ;;  %2480 = vmatprep.subr.bf16.mxu1 %v2646_v9  ;;  %v421_v13 = vunpack.c.l.bf16 %v2865_v2  ;;  %v422_v53 = vunpack.c.h.bf16 %v2865_v2 }
 0x131   : > { %v969_v54 = vmul.f32 0.044715, %v953_v22  ;;  %v961_v33 = vmul.f32 0.5, %v953_v22 }
 0x132   : > { %2432 = vmatprep.mubr.msk.bf16.mxu0 %vm622_vm1, %v1036_v62  ;;  %v995_v19 = vadd.f32 %v987_v7, %v955_v29 }
 0x133   : > { %2433 = vmatmul.mubr.msk.bf16.vlgmr.msra.gmra.mrb[16].mxu0 %vm622_vm1, %v1037_v45  ;;  %v977_v30 = vmul.f32 %v969_v54, %v953_v22  ;;  %v2666_v34 = vpop.eup %2665 }
 0x134   : > { %v1003_v58 = vmul.f32 0.7978846, %v995_v19  ;;  %v1018_v46 = vadd.f32 1.0, %v2666_v34  ;;  %2441 = vmatpush3.bf16.msra.mxu0 %v2644_v14  ;;  %v427_v34 = vunpack.c.l.bf16 %v2877_v5 }
 0x135   : > { %v985_v23 = vmul.f32 %v977_v30, %v953_v22  ;;  %2450 = vmatprep.subr.bf16.mxu0 %v2647_v6 }
 0x136   : > { %2669 = vtanh.f32 %v1003_v58  ;;  %v1026_v44 = vmul.f32 %v1018_v46, %v962_v49  ;;  %v2649_v58 = vld [vmem:[%s3461_s9 + $0x10] sm:$0xff]   ;;  %v425_v46 = vunpack.c.l.bf16 %v2869_v4 }
 0x137   : > { %v993_v56 = vadd.f32 %v985_v23, %v953_v22  ;;  %v2668_v31 = vpop.eup %2667 }
 0x138   : > { %v1016_v42 = vadd.f32 1.0, %v2668_v31  ;;  %v1034_v25 = vmul.f32 %v1026_v44, %v616_v16  ;;  %v428_v44 = vunpack.c.h.bf16 %v2877_v5 }
 0x139   : > { %v1001_v60 = vmul.f32 0.7978846, %v993_v56  ;;  %v2648_v56 = vld [vmem:[%s3461_s9 + $0x28] sm:$0xff]  }
 0x13a   : > { %v1024_v55 = vmul.f32 %v1016_v42, %v960_v27 }
 0x13b   : > { %2671 = vtanh.f32 %v1001_v60 }
 0x13c   : > { %v1032_v59 = vmul.f32 %v1024_v55, %v608_v12  ;;  %v1173_v55 = vld [vmem:[#allocation3] sm:$0xff] }
 0x140   : > { %v2670_v1 = vpop.eup %2669 }
 0x141   : > { %v1019_v47 = vadd.f32 1.0, %v2670_v1 }
 0x143   : > { %v1027_v15 = vmul.f32 %v1019_v47, %v963_v52 }
 0x145   : > { %v2672_v28 = vpop.eup %2671  ;;  %v1035_v38 = vmul.f32 %v1027_v15, %v619_v21  ;;  %v426_v21 = vunpack.c.h.bf16 %v2869_v4 }
 0x146   : > { %v1017_v20 = vadd.f32 1.0, %v2672_v28 }
 0x147   : > { %v1039_v35 = vpack.c.bf16 %v1035_v38, %v1034_v25 }
 0x148   : > { %v1025_v24 = vmul.f32 %v1017_v20, %v961_v33 }
 0x14a   : > { %v1033_v37 = vmul.f32 %v1025_v24, %v611_v63 }
 0x14c   : > { %v1038_v40 = vpack.c.bf16 %v1033_v37, %v1032_v59 }
 0x14e   : > { %2436 = vmatprep.mubr.msk.bf16.mxu0 %vm622_vm1, %v1038_v40 }
 0x14f   : > { %2437 = vmatmul.mubr.msk.bf16.gmra.mrb[20].mxu0 %vm622_vm1, %v1039_v35 }
 0x206   : > { %v2434_v36 = vpop.f32.mrb[16].mxu0 }
 0x207   : > { %v1113_v17 = vadd.f32 %v2434_v36, %v2274_v11  ;;  %v1104_v41 = vpop.f32.mrb[17].mxu0  ;;  %v1368_v36 = vld [vmem:[#allocation3 + $0x2] sm:$0xff] }
 0x208   : > { %v1105_v29 = vadd.f32 %v2274_v11, %v1104_v41  ;;  %v2435_v45 = vpop.f32.mrb[18].mxu0 }
 0x209   : > { %v1137_v0 = vadd.f32 %v1113_v17, %v423_v43  ;;  %v1116_v26 = vadd.f32 %v2435_v45, %v2274_v11  ;;  %v1107_v50 = vpop.f32.mrb[19].mxu0  ;;  %v2650_v43 = vld [vmem:[%s3461_s9 + $0x30] sm:$0xff]  }
 0x20a   : > { %v1135_v48 = vadd.f32 %v1105_v29, %v421_v13  ;;  %v1108_v51 = vadd.f32 %v2274_v11, %v1107_v50 }
 0x20b   : > { %1167 = vst.msk [vmem:[#allocation3 + $0x31] sm:$0xff] %vm464_vm0, %v1137_v0  ;;  %v1138_v18 = vadd.f32 %v1116_v26, %v424_v10 }
 0x20c   : > { %1165 = vst.msk [vmem:[#allocation3 + $0x11] sm:$0xff] %vm464_vm0, %v1135_v48  ;;  %v1136_v39 = vadd.f32 %v1108_v51, %v422_v53 }
 0x20d   : > { %1168 = vst.msk [vmem:[#allocation3 + $0x41] sm:$0xff] %vm464_vm0, %v1138_v18 }
 0x20e   : > { %1166 = vst.msk [vmem:[#allocation3 + $0x21] sm:$0xff] %vm464_vm0, %v1136_v39 }
 0x212   : > { %v3294_v61 = vld [vmem:[#allocation3 + $0x31] sm:$0xff] }
 0x213   : > { %v1188_v57 = vld [vmem:[#allocation3 + $0x11] sm:$0xff] }
 0x214   : > { %v1195_v2 = vpack.c.bf16 %v1188_v57, %v1187_v3  ;;  %v1477_v62 = vld [vmem:[#allocation3 + $0x40] sm:$0xff]  ;;  %v1474_v7 = vld [vmem:[#allocation3 + $0x10] sm:$0xff] }
 0x215   : > { %v1189_v22 = vld [vmem:[#allocation3 + $0x21] sm:$0xff]  ;;  %v1476_v30 = vld [vmem:[#allocation3 + $0x30] sm:$0xff]  ;;  %v1181_v40 = vpack.c.bf16 %v1474_v7, %v1173_v55 }
 0x216   : > { %v1475_v8 = vld [vmem:[#allocation3 + $0x20] sm:$0xff]  ;;  %2442 = vmatprep.mubr.msk.bf16.mxu0 %vm464_vm0, %v1195_v2  ;;  %v3298_v54 = vpack.c.bf16 %v3294_v61, %v1189_v22  ;;  %v1483_v23 = vpack.c.bf16 %v1477_v62, %v1476_v30  ;;  %v1588_v32 = vpack.c.bf16 %v1189_v22, %v1188_v57  ;;  %v1369_v17 = vld [vmem:[#allocation3 + $0x12] sm:$0xff] }
 0x217   : > { %v1482_v19 = vpack.c.bf16 %v1475_v8, %v1474_v7  ;;  %v1191_v5 = vld [vmem:[#allocation3 + $0x41] sm:$0xff]  ;;  %v1376_v29 = vpack.c.bf16 %v1369_v17, %v1368_v36  ;;  %v1371_v48 = vld [vmem:[#allocation3 + $0x32] sm:$0xff] }
 0x218   : > { %2443 = vmatmul.mubr.msk.bf16.vlgmr.msra.gmra.mrb[24].mxu0 %vm464_vm0, %v3298_v54  ;;  %v1687_v10 = vld [vmem:[#allocation3 + $0x22] sm:$0xff]  ;;  %v2651_v57 = vld [vmem:[%s3461_s9 + $0x38] sm:$0xff]  }
 0x219   : > { %2472 = vmatprep.mubr.msk.bf16.mxu1 %vm464_vm0, %v1482_v19  ;;  %2451 = vmatpush3.bf16.msra.mxu0 %v2647_v6  ;;  %v1694_v0 = vpack.c.bf16 %v1687_v10, %v1369_v17  ;;  %v1372_v26 = vld [vmem:[#allocation3 + $0x42] sm:$0xff]  ;;  %v1377_v18 = vpack.c.bf16 %v1371_v48, %v1687_v10  ;;  %v1800_v19 = vld [vmem:[#allocation3 + $0x90] sm:$0xff] }
 0x21a   : > { %2473 = vmatmul.mubr.msk.bf16.vlgmr.msra.gmra.mrb[0].mxu1 %vm464_vm0, %v1483_v23  ;;  %2460 = vmatprep.subr.bf16.mxu0 %v2649_v58  ;;  %v1695_v3 = vpack.c.bf16 %v1372_v26, %v1371_v48 }
 0x21b   : > { %2481 = vmatpush3.bf16.msra.mxu1 %v2646_v9  ;;  %v1182_v9 = vpack.c.bf16 %v1476_v30, %v1475_v8  ;;  %v2652_v8 = vld [vmem:[%s3461_s9 + $0x40] sm:$0xff]  }
 0x21c   : > { %2490 = vmatprep.subr.bf16.mxu1 %v2648_v56 }
 0x222   : > { %v2438_v60 = vpop.f32.mrb[20].mxu0 }
 0x223   : > { %v1129_v49 = vadd.f32 %v2438_v60, %v2274_v11  ;;  %v1120_v31 = vpop.f32.mrb[21].mxu0 }
 0x224   : > { %v1121_v1 = vadd.f32 %v2274_v11, %v1120_v31  ;;  %v2439_v16 = vpop.f32.mrb[22].mxu0 }
 0x225   : > { %v1141_v52 = vadd.f32 %v1129_v49, %v427_v34  ;;  %v1132_v47 = vadd.f32 %v2439_v16, %v2274_v11  ;;  %v1123_v42 = vpop.f32.mrb[23].mxu0 }
 0x226   : > { %v1139_v25 = vadd.f32 %v1121_v1, %v425_v46  ;;  %v1124_v15 = vadd.f32 %v2274_v11, %v1123_v42  ;;  %v1589_v11 = vpack.c.bf16 %v1191_v5, %v3294_v61 }
 0x227   : > { %1171 = vst.msk [vmem:[#allocation3 + $0x71] sm:$0xff] %vm464_vm0, %v1141_v52  ;;  %v1142_v27 = vadd.f32 %v1132_v47, %v428_v44  ;;  %v2341_v52 = vld [vmem:[%s3462_s10] ss:$0 sm:$0xff] }
 0x228   : > { %1169 = vst.msk [vmem:[#allocation3 + $0x51] sm:$0xff] %vm464_vm0, %v1139_v25  ;;  %v1140_v28 = vadd.f32 %v1124_v15, %v426_v21  ;;  %v2342_v25 = vld [vmem:[%s3463_s11] ss:$0 sm:$0xff] }
 0x229   : > { %1172 = vst.msk [vmem:[#allocation3 + $0x81] sm:$0xff] %vm464_vm0, %v1142_v27 }
 0x22a   : > { %1170 = vst.msk [vmem:[#allocation3 + $0x61] sm:$0xff] %vm464_vm0, %v1140_v28 }
 0x22e   : > { %v1194_v4 = vld [vmem:[#allocation3 + $0x71] sm:$0xff] }
 0x22f   : > { %v1192_v38 = vld [vmem:[#allocation3 + $0x51] sm:$0xff] }
 0x230   : > { %v3318_v12 = vpack.c.bf16 %v1192_v38, %v1191_v5  ;;  %v3320_v33 = vld [vmem:[#allocation3 + $0x80] sm:$0xff]  ;;  %v1478_v35 = vld [vmem:[#allocation3 + $0x50] sm:$0xff] }
 0x231   : > { %v1193_v20 = vld [vmem:[#allocation3 + $0x61] sm:$0xff]  ;;  %v1480_v37 = vld [vmem:[#allocation3 + $0x70] sm:$0xff]  ;;  %v1183_v6 = vpack.c.bf16 %v1478_v35, %v1477_v62  ;;  %v1804_v30 = vpack.c.bf16 %v1800_v19, %v3320_v33 }
 0x232   : > { %v1479_v63 = vld [vmem:[#allocation3 + $0x60] sm:$0xff]  ;;  %2446 = vmatprep.mubr.msk.bf16.mxu0 %vm464_vm0, %v3318_v12  ;;  %v3324_v24 = vpack.c.bf16 %v1194_v4, %v1193_v20  ;;  %v1485_v14 = vpack.c.bf16 %v3320_v33, %v1480_v37  ;;  %v1590_v13 = vpack.c.bf16 %v1193_v20, %v1192_v38  ;;  %v1373_v50 = vld [vmem:[#allocation3 + $0x52] sm:$0xff] }
 0x233   : > { %v1484_v59 = vpack.c.bf16 %v1479_v63, %v1478_v35  ;;  %v1587_v41 = vld [vmem:[#allocation3 + $0x81] sm:$0xff]  ;;  %v1184_v53 = vpack.c.bf16 %v1480_v37, %v1479_v63  ;;  %v1378_v39 = vpack.c.bf16 %v1373_v50, %v1372_v26  ;;  %v1375_v62 = vld [vmem:[#allocation3 + $0x72] sm:$0xff] }
 0x234   : > { %2447 = vmatmul.mubr.msk.bf16.gmra.mrb[28].mxu0 %vm464_vm0, %v3324_v24  ;;  %v1591_v45 = vpack.c.bf16 %v1587_v41, %v1194_v4  ;;  %v1691_v51 = vld [vmem:[#allocation3 + $0x62] sm:$0xff] }
 0x235   : > { %2476 = vmatprep.mubr.msk.bf16.mxu1 %vm464_vm0, %v1484_v59  ;;  %2452 = vmatprep.mubr.msk.bf16.mxu0 %vm464_vm0, %v1181_v40  ;;  %v1696_v2 = vpack.c.bf16 %v1691_v51, %v1373_v50  ;;  %v1693_v61 = vld [vmem:[#allocation3 + $0x82] sm:$0xff]  ;;  %v1379_v22 = vpack.c.bf16 %v1375_v62, %v1691_v51 }
 0x236   : > { %2477 = vmatmul.mubr.msk.bf16.gmra.mrb[4].mxu1 %vm464_vm0, %v1485_v14  ;;  %v1697_v7 = vpack.c.bf16 %v1693_v61, %v1375_v62 }
 0x237   : > { %2482 = vmatprep.mubr.msk.bf16.mxu1 %vm464_vm0, %v1588_v32 }
 0x23c   : > { %2453 = vmatmul.mubr.msk.bf16.vlgmr.msra.gmra.mrb[24].mxu0 %vm464_vm0, %v1182_v9 }
 0x23d   : > { %2456 = vmatprep.mubr.msk.bf16.mxu0 %vm464_vm0, %v1183_v6  ;;  %2461 = vmatpush3.bf16.msra.mxu0 %v2649_v58  ;;  %v1906_v58 = vld [vmem:[#allocation3 + $0x91] sm:$0xff] }
 0x23e   : > { %2483 = vmatmul.mubr.msk.bf16.vlgmr.msra.gmra.mrb[0].mxu1 %vm464_vm0, %v1589_v11  ;;  %v1910_v23 = vpack.c.bf16 %v1906_v58, %v1587_v41 }
 0x23f   : > { %2491 = vmatpush3.bf16.msra.mxu1 %v2648_v56  ;;  %2486 = vmatprep.mubr.msk.bf16.mxu1 %vm464_vm0, %v1590_v13  ;;  %v2012_v56 = vld [vmem:[#allocation3 + $0x92] sm:$0xff] }
 0x240   : > { %2500 = vmatprep.subr.bf16.mxu1 %v2650_v43 }
 0x244   : > { %2457 = vmatmul.mubr.msk.bf16.gmra.mrb[28].mxu0 %vm464_vm0, %v1184_v53 }
 0x245   : > { %2462 = vmatprep.mubr.msk.bf16.mxu0 %vm464_vm0, %v1376_v29 }
 0x246   : > { %2487 = vmatmul.mubr.msk.bf16.gmra.mrb[4].mxu1 %vm464_vm0, %v1591_v45 }
 0x247   : > { %2492 = vmatprep.mubr.msk.bf16.mxu1 %vm464_vm0, %v1694_v0 }
 0x24c   : > { %2463 = vmatmul.mubr.msk.bf16.vlgmr.msra.gmra.mrb[24].mxu0 %vm464_vm0, %v1377_v18 }
 0x24d   : > { %2466 = vmatprep.mubr.msk.bf16.mxu0 %vm464_vm0, %v1378_v39 }
 0x24e   : > { %2493 = vmatmul.mubr.msk.bf16.vlgmr.msra.gmra.mrb[0].mxu1 %vm464_vm0, %v1695_v3 }
 0x24f   : > { %2501 = vmatpush3.bf16.msra.mxu1 %v2650_v43  ;;  %2496 = vmatprep.mubr.msk.bf16.mxu1 %vm464_vm0, %v1696_v2 }
 0x250   : > { %2510 = vmatprep.subr.bf16.mxu1 %v2651_v57 }
 0x254   : > { %2467 = vmatmul.mubr.msk.bf16.gmra.mrb[28].mxu0 %vm464_vm0, %v1379_v22 }
 0x256   : > { %2497 = vmatmul.mubr.msk.bf16.gmra.mrb[4].mxu1 %vm464_vm0, %v1697_v7 }
 0x257   : > { %2502 = vmatprep.mubr.msk.bf16.mxu1 %vm464_vm0, %v1182_v9 }
 0x25e   : > { %2503 = vmatmul.mubr.msk.bf16.vlgmr.msra.gmra.mrb[0].mxu1 %vm464_vm0, %v1183_v6 }
 0x25f   : > { %2511 = vmatpush3.bf16.msra.mxu1 %v2651_v57  ;;  %2506 = vmatprep.mubr.msk.bf16.mxu1 %vm464_vm0, %v1184_v53 }
 0x260   : > { %2520 = vmatprep.subr.bf16.mxu1 %v2652_v8 }
 0x266   : > { %2507 = vmatmul.mubr.msk.bf16.gmra.mrb[4].mxu1 %vm464_vm0, %v1804_v30 }
 0x267   : > { %2512 = vmatprep.mubr.msk.bf16.mxu1 %vm464_vm0, %v3298_v54  ;;  %v2016_v54 = vpack.c.bf16 %v2012_v56, %v1693_v61 }
 0x26e   : > { %2513 = vmatmul.mubr.msk.bf16.vlgmr.msra.gmra.mrb[0].mxu1 %vm464_vm0, %v3318_v12 }
 0x26f   : > { %2521 = vmatpush3.bf16.msra.mxu1 %v2652_v8  ;;  %2516 = vmatprep.mubr.msk.bf16.mxu1 %vm464_vm0, %v3324_v24 }
 0x276   : > { %2517 = vmatmul.mubr.msk.bf16.gmra.mrb[4].mxu1 %vm464_vm0, %v1910_v23 }
 0x277   : > { %2522 = vmatprep.mubr.msk.bf16.mxu1 %vm464_vm0, %v1377_v18 }
 0x27e   : > { %2523 = vmatmul.mubr.msk.bf16.vlgmr.msra.gmra.mrb[0].mxu1 %vm464_vm0, %v1378_v39 }
 0x27f   : > { %2526 = vmatprep.mubr.msk.bf16.mxu1 %vm464_vm0, %v1379_v22 }
 0x286   : > { %2527 = vmatmul.mubr.msk.bf16.gmra.mrb[4].mxu1 %vm464_vm0, %v2016_v54 }
 0x31f   : > { %v2464_v34 = vpop.f32.mrb[24].mxu0 }
 0x320   : > { %v1435_v60 = vpop.f32.mrb[25].mxu0 }
 0x321   : > { %v2465_v46 = vpop.f32.mrb[26].mxu0 }
 0x322   : > { %v1438_v49 = vpop.f32.mrb[27].mxu0 }
 0x327   : > { %v2468_v31 = vpop.f32.mrb[28].mxu0 }
 0x328   : > { %v1451_v44 = vpop.f32.mrb[29].mxu0 }
 0x329   : > { %v2469_v1 = vpop.f32.mrb[30].mxu0 }
 0x32a   : > { %v1454_v16 = vpop.f32.mrb[31].mxu0 }
 0x351   : > { %v2524_v21 = vpop.f32.mrb[0].mxu1 }
 0x352   : > { %v2530_v47 = vadd.f32 %v2524_v21, %v2464_v34  ;;  %v2072_v42 = vpop.f32.mrb[1].mxu1 }
 0x353   : > { %v2531_v15 = vadd.f32 %v2072_v42, %v1435_v60  ;;  %v2525_v27 = vpop.f32.mrb[2].mxu1 }
 0x354   : > { %v2120_v28 = vmul.f32 %v2530_v47, %v2341_v52  ;;  %v2532_v5 = vadd.f32 %v2525_v27, %v2465_v46  ;;  %v2075_v38 = vpop.f32.mrb[3].mxu1 }
 0x355   : > { %v2118_v12 = vmul.f32 %v2531_v15, %v2341_v52  ;;  %v2533_v4 = vadd.f32 %v2075_v38, %v1438_v49 }
 0x356   : > { %v2135_v55 = vadd.f32 %v2342_v25, %v2120_v28  ;;  %v2121_v33 = vmul.f32 %v2532_v5, %v2341_v52 }
 0x357   : > { %v2133_v20 = vadd.f32 %v2342_v25, %v2118_v12  ;;  %v2119_v35 = vmul.f32 %v2533_v4, %v2341_v52 }
 0x358   : > { %v2143_v63 = vmax.f32 %v2135_v55, 0.0  ;;  %v2136_v24 = vadd.f32 %v2342_v25, %v2121_v33 }
 0x359   : > { %v2141_v59 = vmax.f32 %v2133_v20, 0.0  ;;  %v2134_v37 = vadd.f32 %v2342_v25, %v2119_v35  ;;  %v2528_v40 = vpop.f32.mrb[4].mxu1 }
 0x35a   : > { %2151 = vst.msk [vmem:[%s3382_s28 + $0x10] sm:$0xff] %vm464_vm0, %v2143_v63  ;;  %v2144_v14 = vmax.f32 %v2136_v24, 0.0  ;;  %v2534_v32 = vadd.f32 %v2528_v40, %v2468_v31  ;;  %v2088_v9 = vpop.f32.mrb[5].mxu1 }
 0x35b   : > { %2149 = vst.msk [vmem:[%s3382_s28] sm:$0xff] %vm464_vm0, %v2141_v59  ;;  %v2142_v6 = vmax.f32 %v2134_v37, 0.0  ;;  %v2535_v11 = vadd.f32 %v2088_v9, %v1451_v44  ;;  %v2529_v43 = vpop.f32.mrb[6].mxu1 }
 0x35c   : > { %2152 = vst.msk [vmem:[%s3382_s28 + $0x18] sm:$0xff] %vm464_vm0, %v2144_v14  ;;  %v2124_v13 = vmul.f32 %v2534_v32, %v2341_v52  ;;  %v2536_v36 = vadd.f32 %v2529_v43, %v2469_v1  ;;  %v2091_v17 = vpop.f32.mrb[7].mxu1 }
 0x35d   : > { %2150 = vst.msk [vmem:[%s3382_s28 + $0x8] sm:$0xff] %vm464_vm0, %v2142_v6  ;;  %v2122_v41 = vmul.f32 %v2535_v11, %v2341_v52  ;;  %v2537_v10 = vadd.f32 %v2091_v17, %v1454_v16 }
 0x35e   : > { %v2139_v53 = vadd.f32 %v2342_v25, %v2124_v13  ;;  %v2125_v29 = vmul.f32 %v2536_v36, %v2341_v52 }
 0x35f   : > { %v2137_v45 = vadd.f32 %v2342_v25, %v2122_v41  ;;  %v2123_v0 = vmul.f32 %v2537_v10, %v2341_v52 }
 0x360   : > { %v2147_v26 = vmax.f32 %v2139_v53, 0.0  ;;  %v2140_v50 = vadd.f32 %v2342_v25, %v2125_v29 }
 0x361   : > { %v2145_v48 = vmax.f32 %v2137_v45, 0.0  ;;  %v2138_v51 = vadd.f32 %v2342_v25, %v2123_v0 }
 0x362   : > { %2155 = vst.msk [vmem:[%s3382_s28 + $0x30] sm:$0xff] %vm464_vm0, %v2147_v26  ;;  %v2148_v18 = vmax.f32 %v2140_v50, 0.0 }
 0x363   : > { %2153 = vst.msk [vmem:[%s3382_s28 + $0x20] sm:$0xff] %vm464_vm0, %v2145_v48  ;;  %v2146_v39 = vmax.f32 %v2138_v51, 0.0 }
 0x364   : > { %2156 = vst.msk [vmem:[%s3382_s28 + $0x38] sm:$0xff] %vm464_vm0, %v2148_v18 }
 0x365   : > { %2154 = vst.msk [vmem:[%s3382_s28 + $0x28] sm:$0xff] %vm464_vm0, %v2146_v39 }
 0x366   : > { %2686 = shalt.err (!%p2683_p3)
}
 0x367   : > { %s2687_s16 = scalar_lea.hbm %s3399_s19, 1024  ;;  %s2691_s26 = scalar_lea.hbm %s3464_s12, 2048 }
 0x368   : > { %p2688_p4 = scmp.ne.s32.totalorder %s3399_s19, %s2687_s16  ;;  %p2692_p9 = scmp.lt.u32.totalorder %s3399_s19, %s3464_s12 }
 0x369   : > { %p2693_p10 = scmp.lt.u32.totalorder %s2691_s26, %s2687_s16  ;;  %p2695_p12 = scmp.lt.u32.totalorder %s2687_s16, %s3399_s19 }
 0x36a   : > { %p2689_p7 = pnand %p2688_p4, %p2844_p5 }
 0x36b   : > { %p2694_p11 = por %p2693_p10, %p2692_p9 }
 0x36c   : > { %p2690_p8 = pneg %p2689_p7 }
 0x36d   : > { %p2696_p13 = por %p2695_p12, %p2694_p11 }
 0x36f   : > { %p2697_p0 = pnand %p2696_p13, %p2690_p8 }
 0x371   : > { %2700 = shalt.err (!%p2697_p0)
}
 0x372   : > { %s2739_s20 = smov 128   ;;  %s2740_s17 = smov 8  }
 0x373   : > { %2595 = dma.vmem_to_hbm [thread:$0]  (%p2844_p5), %s3401_s15, 1024, %s3399_s19, %s3411_s25, %s2739_s20, %s2739_s20, %s2740_s17  }
 0x374 PF: > { %p2601_p1 = scmp.ge.s32.totalorder %s2735_s24, 2  ;;  %s2186_s0 = sand.u32 1, %s2723_s21  }
 0x375   : > { %s2187_s16 = scalar_lea.sflag [#allocation5], %s2186_s0 }
 0x376   : > { %p2598_p2 = pnand %p2601_p1, %p2848_p6 }
 0x378   : > { %2718 = dma.done.wait (!%p2598_p2), %s2187_s16, 1024  }
 0x379   : > { %2720 = vsyncadd (!%p2598_p2), %s2187_s16, 4294966272  ;;  %p22_p3 = scmp.ge.s32.totalorder %s2831_s27, 4   ;;  %s3469_s21 = smov %s2727_s22 }
 0x37a   : > { %s3470_s22 = smov %s2731_s23  ;;  %s3471_s23 = smov %s2842_s30 }
 0x37b   : > { %s3472_s24 = smov %s2831_s27  ;;  %24 = sbr.rel (!%p22_p3) target bundleno = 5 (0x5), region = 123 }
 0x382   :  { %2192 = vsyncpa [#allocation5], 1 }
 0x383   :  { %2194 = vsyncpa [#allocation5 + $0x1], 1 }

</bundles_post_ra>
